<compile_context>
chip_gen: v5e
topology: v5e:2x2
jax: 0.10.0
libtpu: 0.0.40
codegen_flags: <defaults>
</compile_context>

<pallas_src>
import math
import functools

import jax
import jax.numpy as jnp
import numpy as np
from jax.experimental import pallas as pl
from jax.experimental.pallas import tpu as pltpu

# ----------------------------- sizes (small, scaled) ------------------------------
B = 2          # batch
S = 8          # sequence length
H = 16         # "roberta" hidden size  -> d_model = 2*H = 32
D = 2 * H      # d_model of encoder layer / conv1 in_channels
NHEAD = 4      # nn.TransformerEncoderLayer(nhead=4)
FF = 64        # dim_feedforward   (scaled stand-in for the default 2048)
C1 = 64        # conv1 out channels (scaled stand-in for 1024)
C2 = 32        # conv2 out channels (scaled stand-in for 512)
C3 = 1         # conv3 out channels (as in the module)
LN_EPS = 1e-5

# rows of the packed bias/gain/conv3-tap table (padded to 128 lanes each)
R_BQKV = 0    # (1, 3D)  fused q/k/v bias
R_B1   = 1    # (1, FF)  FFN bias 1
R_CB1  = 2    # (1, C1)  conv1 bias
R_CB2  = 3    # (1, C2)  conv2 bias
R_CB3  = 4    # (1, 1)   conv3 bias
R_BO   = 5    # (1, D)   attn out-proj bias
R_B2   = 6    # (1, D)   FFN bias 2
R_G1   = 7    # (1, D)   LayerNorm1 gamma
R_BE1  = 8    # (1, D)   LayerNorm1 beta
R_G2   = 9    # (1, D)   LayerNorm2 gamma
R_BE2  = 10   # (1, D)   LayerNorm2 beta
R_W3K0 = 11   # (1, C2)  conv3 tap k=0
R_W3K1 = 12   # (1, C2)  conv3 tap k=1
R_W3K2 = 13   # (1, C2)  conv3 tap k=2
VEC_ROWS = 14


# =============================== fused Pallas kernel ===============================

def fused_cnn_kernel(hs1_ref, hs2_ref, wqkv_ref, wo_ref, w1_ref, w2_ref,
                     cw1_ref, cw2_ref, vec_ref, o_ref, *, nhead):
    """cat(hs[-1], hs[-2]) -> TransformerEncoderLayer (post-norm, ReLU, batch_first)
    -> conv1 -> conv2 -> conv3 (Conv1d k=3, pad=1) -> mean over sequence.
    Whole batch in one grid-less call; all activations channels-last."""
    bsz, seq, _ = hs1_ref.shape
    d_model = wo_ref.shape[0]
    ff = w1_ref.shape[1]
    c1 = cw1_ref.shape[1] // 3
    c2 = cw2_ref.shape[1] // 3
    hd = d_model // nhead
    scale = 1.0 / math.sqrt(hd)
    inv_s = 1.0 / seq

    # weights: fetched exactly once (hoisted out of the unrolled batch loop)
    wqkv = wqkv_ref[...]
    wo = wo_ref[...]
    w1 = w1_ref[...]
    w2 = w2_ref[...]
    cw1 = cw1_ref[...]
    cw2 = cw2_ref[...]

    def vrow(r, width):
        return vec_ref[r:r + 1, :width]          # (1, width) static slice

    bqkv = vrow(R_BQKV, 3 * d_model)
    b1 = vrow(R_B1, ff)
    cb1 = vrow(R_CB1, c1)
    cb2 = vrow(R_CB2, c2)
    cb3 = vrow(R_CB3, 1)
    bo = vrow(R_BO, d_model)
    b2 = vrow(R_B2, d_model)
    g1, be1 = vrow(R_G1, d_model), vrow(R_BE1, d_model)
    g2, be2 = vrow(R_G2, d_model), vrow(R_BE2, d_model)
    w3k0 = vrow(R_W3K0, c2)
    w3k1 = vrow(R_W3K1, c2)
    w3k2 = vrow(R_W3K2, c2)
    w3sum = w3k0 + w3k1 + w3k2

    # shift matrices implementing the k=0 / k=2 zero-padded conv taps as MXU
    # matmuls instead of pad + slice VMEM copies.
    row = jax.lax.broadcasted_iota(jnp.int32, (seq, seq), 0)
    col = jax.lax.broadcasted_iota(jnp.int32, (seq, seq), 1)
    sdn = (row == col + 1).astype(jnp.float32)   # (sdn @ y)[s] = y[s-1], row 0 -> 0
    sup = (row == col - 1).astype(jnp.float32)   # (sup @ y)[s] = y[s+1], row S-1 -> 0

    def layer_norm(y, g, b):
        mu = jnp.mean(y, axis=-1, keepdims=True)
        var = jnp.mean((y - mu) ** 2, axis=-1, keepdims=True)
        return (y - mu) * jax.lax.rsqrt(var + LN_EPS) * g + b

    for b in range(bsz):                         # tiny static batch, fully unrolled
        # torch.cat([hs[-1], hs[-2]], -1) for this batch row
        xb = jnp.concatenate([hs1_ref[b], hs2_ref[b]], axis=-1)          # (S, D)

        # ---------------- TransformerEncoderLayer ----------------
        qkv = jnp.dot(xb, wqkv, preferred_element_type=jnp.float32) + bqkv
        qb = qkv[:, 0:d_model]
        kb = qkv[:, d_model:2 * d_model]
        vb = qkv[:, 2 * d_model:3 * d_model]

        attn = None
        for h in range(nhead):
            lo, hi = h * hd, (h + 1) * hd
            qh, kh, vh = qb[:, lo:hi], kb[:, lo:hi], vb[:, lo:hi]
            sc = jnp.dot(qh, kh.T, preferred_element_type=jnp.float32) * scale
            sc = sc - jnp.max(sc, axis=-1, keepdims=True)
            p = jnp.exp(sc)
            p = p * pl.reciprocal(jnp.sum(p, axis=-1, keepdims=True), approx=True)
            oh = jnp.dot(p, vh, preferred_element_type=jnp.float32)     # (S, hd)
            # fold out-proj per head: concat(o_h) @ Wo == sum_h o_h @ Wo[h*hd:(h+1)*hd]
            contrib = jnp.dot(oh, wo[lo:hi, :], preferred_element_type=jnp.float32)
            attn = contrib if attn is None else attn + contrib
        attn = attn + bo

        y = layer_norm(xb + attn, g1, be1)
        hid = jnp.maximum(jnp.dot(y, w1, preferred_element_type=jnp.float32) + b1, 0.0)
        ffo = jnp.dot(hid, w2, preferred_element_type=jnp.float32) + b2
        z = layer_norm(y + ffo, g2, be2)

        # ------------- conv1 -> conv2 (Conv1d k=3, pad=1, no activation) -------------
        # all 3 taps in one matmul against the lane-packed weight [W0 | W1 | W2],
        # then shift-matrix matmuls place taps 0/2 at the right sequence rows.
        y1 = jnp.dot(z, cw1, preferred_element_type=jnp.float32)        # (S, 3*C1)
        c1a = (y1[:, c1:2 * c1]
               + jnp.dot(sdn, y1[:, 0:c1], preferred_element_type=jnp.float32)
               + jnp.dot(sup, y1[:, 2 * c1:3 * c1], preferred_element_type=jnp.float32)
               + cb1)                                                    # (S, C1)
        y2 = jnp.dot(c1a, cw2, preferred_element_type=jnp.float32)      # (S, 3*C2)
        c2a = (y2[:, c2:2 * c2]
               + jnp.dot(sdn, y2[:, 0:c2], preferred_element_type=jnp.float32)
               + jnp.dot(sup, y2[:, 2 * c2:3 * c2], preferred_element_type=jnp.float32)
               + cb2)                                                    # (S, C2)

        # -------- conv3 (Cout=1) + mean over sequence, fused by linearity --------
        # mean_s conv3(c2)[s] = b3 + (1/S) * [ (T-c2[S-1])@w3_0 + T@w3_1 + (T-c2[0])@w3_2 ]
        tot = jnp.sum(c2a, axis=0, keepdims=True)                        # (1, C2)
        val = (jnp.sum(tot * w3sum, axis=-1, keepdims=True)
               - jnp.sum(c2a[seq - 1:seq, :] * w3k0, axis=-1, keepdims=True)
               - jnp.sum(c2a[0:1, :] * w3k2, axis=-1, keepdims=True))    # (1, 1)
        o_ref[b:b + 1, :] = val * inv_s + cb3


# =============================== wrapper ===========================================

def cnn_model_forward(hs_last, hs_prev, packed):
    bsz = hs_last.shape[0]
    vmem = pl.BlockSpec(memory_space=pltpu.MemorySpace.VMEM)
    args = [hs_last, hs_prev, packed['wqkv'], packed['wo'], packed['w1'],
            packed['w2'], packed['cw1'], packed['cw2'], packed['vecs']]
    return pl.pallas_call(
        functools.partial(fused_cnn_kernel, nhead=NHEAD),
        out_shape=jax.ShapeDtypeStruct((bsz, 1), jnp.float32),
        in_specs=[vmem] * len(args),
        out_specs=vmem,
    )(*args)


def pack_params(p):
    """Repack 'natural' (PyTorch-like) params into the kernel layout (done once)."""
    wqkv = jnp.concatenate([p['wq'], p['wk'], p['wv']], axis=1)          # (D, 3D)
    bqkv = jnp.concatenate([p['bq'], p['bk'], p['bv']], axis=1)          # (1, 3D)

    def pack_conv(w):                       # (3, Cin, Cout) -> (Cin, 3*Cout)
        k, cin, cout = w.shape
        return jnp.transpose(w, (1, 0, 2)).reshape(cin, k * cout)

    w3 = p['cw3'][:, :, 0]                                               # (3, C2)

    def pad_row(v):
        v = v.reshape(-1)
        return jnp.pad(v, (0, 128 - v.shape[0]))[None, :]

    rows = [bqkv, p['b1'], p['cb1'], p['cb2'], p['cb3'], p['bo'], p['b2'],
            p['g1'], p['be1'], p['g2'], p['be2'], w3[0], w3[1], w3[2]]
    assert len(rows) == VEC_ROWS
    vecs = jnp.concatenate([pad_row(r) for r in rows], axis=0)           # (14, 128)

    return {'wqkv': wqkv, 'wo': p['wo'], 'w1': p['w1'], 'w2': p['w2'],
            'cw1': pack_conv(p['cw1']), 'cw2': pack_conv(p['cw2']), 'vecs': vecs}


# =============================== pure-JAX reference ================================

def _ref_forward(hs_last, hs_prev, p):
    x = jnp.concatenate([hs_last, hs_prev], axis=-1)
    b, s, d = x.shape
    hd = d // NHEAD

    def heads(t):
        return t.reshape(b, s, NHEAD, hd).transpose(0, 2, 1, 3)

    q = heads(x @ p['wq'] + p['bq'])
    k = heads(x @ p['wk'] + p['bk'])
    v = heads(x @ p['wv'] + p['bv'])
    sc = jnp.einsum('bhqd,bhkd->bhqk', q, k) / math.sqrt(hd)
    a = jax.nn.softmax(sc, axis=-1)
    o = jnp.einsum('bhqk,bhkd->bhqd', a, v).transpose(0, 2, 1, 3).reshape(b, s, d)
    attn = o @ p['wo'] + p['bo']

    def ln(y, g, bb):
        mu = y.mean(-1, keepdims=True)
        var = ((y - mu) ** 2).mean(-1, keepdims=True)
        return (y - mu) / jnp.sqrt(var + LN_EPS) * g + bb

    y = ln(x + attn, p['g1'], p['be1'])
    ff = jnp.maximum(y @ p['w1'] + p['b1'], 0.0) @ p['w2'] + p['b2']
    z = ln(y + ff, p['g2'], p['be2'])

    def conv(xin, w, bb):
        seq = xin.shape[1]
        xpad = jnp.pad(xin, ((0, 0), (1, 1), (0, 0)))
        out = sum(jnp.einsum('bsc,cd->bsd', xpad[:, kk:kk + seq], w[kk]) for kk in range(3))
        return out + bb

    c = conv(conv(conv(z, p['cw1'], p['cb1']), p['cw2'], p['cb2']), p['cw3'], p['cb3'])
    return jnp.mean(c, axis=1)


# =============================== params & main =====================================

def make_params(key):
    ks = jax.random.split(key, 24)
    n = lambda i, shape, sc=0.05: (jax.random.normal(ks[i], shape, jnp.float32) * sc)
    return {
        # transformer encoder layer
        'wq': n(0, (D, D)),  'bq': n(1, (1, D)),
        'wk': n(2, (D, D)),  'bk': n(3, (1, D)),
        'wv': n(4, (D, D)),  'bv': n(5, (1, D)),
        'wo': n(6, (D, D)),  'bo': n(7, (1, D)),
        'w1': n(8, (D, FF)), 'b1': n(9, (1, FF)),
        'w2': n(10, (FF, D)), 'b2': n(11, (1, D)),
        'g1': jnp.ones((1, D), jnp.float32),  'be1': jnp.zeros((1, D), jnp.float32),
        'g2': jnp.ones((1, D), jnp.float32),  'be2': jnp.zeros((1, D), jnp.float32),
        # conv stack (weights stored as (K=3, Cin, Cout))
        'cw1': n(12, (3, D, C1)),  'cb1': n(13, (1, C1)),
        'cw2': n(14, (3, C1, C2)), 'cb2': n(15, (1, C2)),
        'cw3': n(16, (3, C2, C3)), 'cb3': n(17, (1, C3)),
    }


if __name__ == "__main__":
    key = jax.random.PRNGKey(0)
    k_p, k_a, k_b = jax.random.split(key, 3)
    params = make_params(k_p)
    packed = pack_params(params)

    # stand-ins for roberta hidden_states[-1] and hidden_states[-2]
    hs_last = jax.random.normal(k_a, (B, S, H), jnp.float32)
    hs_prev = jax.random.normal(k_b, (B, S, H), jnp.float32)

    out = cnn_model_forward(hs_last, hs_prev, packed)
    out = jax.block_until_ready(out)

    ref = _ref_forward(hs_last, hs_prev, params)
    # tolerance accommodates pl.reciprocal(approx=True) in the softmax
    np.testing.assert_allclose(np.asarray(out), np.asarray(ref), rtol=2e-3, atol=2e-3)
    assert out.shape == (B, 1)
    print("KERNEL_OK")
</pallas_src>

<mosaic_0001>
module attributes {stable_mosaic.version = 11 : i64} {
  func.func @fused_cnn_kernel(%arg0: memref<2x8x16xf32, #tpu.memory_space<vmem>>, %arg1: memref<2x8x16xf32, #tpu.memory_space<vmem>>, %arg2: memref<32x96xf32, #tpu.memory_space<vmem>>, %arg3: memref<32x32xf32, #tpu.memory_space<vmem>>, %arg4: memref<32x64xf32, #tpu.memory_space<vmem>>, %arg5: memref<64x32xf32, #tpu.memory_space<vmem>>, %arg6: memref<32x192xf32, #tpu.memory_space<vmem>>, %arg7: memref<64x96xf32, #tpu.memory_space<vmem>>, %arg8: memref<14x128xf32, #tpu.memory_space<vmem>>, %arg9: memref<2x1xf32, #tpu.memory_space<vmem>>) attributes {dimension_semantics = [], scalar_prefetch = 0 : i64, scratch_operands = 0 : i64, tpu.core_type = #tpu.core_type<tc>} {
    %c0 = arith.constant 0 : index
    %c0_0 = arith.constant 0 : index
    %0 = vector.load %arg2[%c0, %c0_0] : memref<32x96xf32, #tpu.memory_space<vmem>>, vector<32x96xf32>
    %c0_1 = arith.constant 0 : index
    %c0_2 = arith.constant 0 : index
    %1 = vector.load %arg3[%c0_1, %c0_2] : memref<32x32xf32, #tpu.memory_space<vmem>>, vector<32x32xf32>
    %c0_3 = arith.constant 0 : index
    %c0_4 = arith.constant 0 : index
    %2 = vector.load %arg4[%c0_3, %c0_4] : memref<32x64xf32, #tpu.memory_space<vmem>>, vector<32x64xf32>
    %c0_5 = arith.constant 0 : index
    %c0_6 = arith.constant 0 : index
    %3 = vector.load %arg5[%c0_5, %c0_6] : memref<64x32xf32, #tpu.memory_space<vmem>>, vector<64x32xf32>
    %c0_7 = arith.constant 0 : index
    %c0_8 = arith.constant 0 : index
    %4 = vector.load %arg6[%c0_7, %c0_8] : memref<32x192xf32, #tpu.memory_space<vmem>>, vector<32x192xf32>
    %c0_9 = arith.constant 0 : index
    %c0_10 = arith.constant 0 : index
    %5 = vector.load %arg7[%c0_9, %c0_10] : memref<64x96xf32, #tpu.memory_space<vmem>>, vector<64x96xf32>
    %c0_11 = arith.constant 0 : index
    %c0_12 = arith.constant 0 : index
    %6 = vector.load %arg8[%c0_11, %c0_12] : memref<14x128xf32, #tpu.memory_space<vmem>>, vector<1x96xf32>
    %c1 = arith.constant 1 : index
    %c0_13 = arith.constant 0 : index
    %7 = vector.load %arg8[%c1, %c0_13] : memref<14x128xf32, #tpu.memory_space<vmem>>, vector<1x64xf32>
    %c2 = arith.constant 2 : index
    %c0_14 = arith.constant 0 : index
    %8 = vector.load %arg8[%c2, %c0_14] : memref<14x128xf32, #tpu.memory_space<vmem>>, vector<1x64xf32>
    %c3 = arith.constant 3 : index
    %c0_15 = arith.constant 0 : index
    %9 = vector.load %arg8[%c3, %c0_15] : memref<14x128xf32, #tpu.memory_space<vmem>>, vector<1x32xf32>
    %c4 = arith.constant 4 : index
    %c0_16 = arith.constant 0 : index
    %10 = vector.load %arg8[%c4, %c0_16] : memref<14x128xf32, #tpu.memory_space<vmem>>, vector<1x1xf32>
    %c5 = arith.constant 5 : index
    %c0_17 = arith.constant 0 : index
    %11 = vector.load %arg8[%c5, %c0_17] : memref<14x128xf32, #tpu.memory_space<vmem>>, vector<1x32xf32>
    %c6 = arith.constant 6 : index
    %c0_18 = arith.constant 0 : index
    %12 = vector.load %arg8[%c6, %c0_18] : memref<14x128xf32, #tpu.memory_space<vmem>>, vector<1x32xf32>
    %c7 = arith.constant 7 : index
    %c0_19 = arith.constant 0 : index
    %13 = vector.load %arg8[%c7, %c0_19] : memref<14x128xf32, #tpu.memory_space<vmem>>, vector<1x32xf32>
    %c8 = arith.constant 8 : index
    %c0_20 = arith.constant 0 : index
    %14 = vector.load %arg8[%c8, %c0_20] : memref<14x128xf32, #tpu.memory_space<vmem>>, vector<1x32xf32>
    %c9 = arith.constant 9 : index
    %c0_21 = arith.constant 0 : index
    %15 = vector.load %arg8[%c9, %c0_21] : memref<14x128xf32, #tpu.memory_space<vmem>>, vector<1x32xf32>
    %c10 = arith.constant 10 : index
    %c0_22 = arith.constant 0 : index
    %16 = vector.load %arg8[%c10, %c0_22] : memref<14x128xf32, #tpu.memory_space<vmem>>, vector<1x32xf32>
    %c11 = arith.constant 11 : index
    %c0_23 = arith.constant 0 : index
    %17 = vector.load %arg8[%c11, %c0_23] : memref<14x128xf32, #tpu.memory_space<vmem>>, vector<1x32xf32>
    %c12 = arith.constant 12 : index
    %c0_24 = arith.constant 0 : index
    %18 = vector.load %arg8[%c12, %c0_24] : memref<14x128xf32, #tpu.memory_space<vmem>>, vector<1x32xf32>
    %c13 = arith.constant 13 : index
    %c0_25 = arith.constant 0 : index
    %19 = vector.load %arg8[%c13, %c0_25] : memref<14x128xf32, #tpu.memory_space<vmem>>, vector<1x32xf32>
    %20 = arith.addf %17, %18 : vector<1x32xf32>
    %21 = arith.addf %20, %19 : vector<1x32xf32>
    %22 = tpu.iota {dimensions = array<i32: 0>} : vector<8x8xi32>
    %23 = tpu.iota {dimensions = array<i32: 1>} : vector<8x8xi32>
    %c1_i32 = arith.constant 1 : i32
    %24 = vector.broadcast %c1_i32 : i32 to vector<8x8xi32>
    %25 = arith.addi %23, %24 : vector<8x8xi32>
    %26 = arith.cmpi eq, %22, %25 : vector<8x8xi32>
    %27 = arith.extui %26 : vector<8x8xi1> to vector<8x8xi32>
    %28 = arith.sitofp %27 : vector<8x8xi32> to vector<8x8xf32>
    %c1_i32_26 = arith.constant 1 : i32
    %29 = vector.broadcast %c1_i32_26 : i32 to vector<8x8xi32>
    %30 = arith.subi %23, %29 : vector<8x8xi32>
    %31 = arith.cmpi eq, %22, %30 : vector<8x8xi32>
    %32 = arith.extui %31 : vector<8x8xi1> to vector<8x8xi32>
    %33 = arith.sitofp %32 : vector<8x8xi32> to vector<8x8xf32>
    %c0_27 = arith.constant 0 : index
    %c0_28 = arith.constant 0 : index
    %c0_29 = arith.constant 0 : index
    %34 = vector.load %arg0[%c0_27, %c0_28, %c0_29] : memref<2x8x16xf32, #tpu.memory_space<vmem>>, vector<1x8x16xf32>
    %35 = vector.shape_cast %34 : vector<1x8x16xf32> to vector<8x16xf32>
    %c0_30 = arith.constant 0 : index
    %c0_31 = arith.constant 0 : index
    %c0_32 = arith.constant 0 : index
    %36 = vector.load %arg1[%c0_30, %c0_31, %c0_32] : memref<2x8x16xf32, #tpu.memory_space<vmem>>, vector<1x8x16xf32>
    %37 = vector.shape_cast %36 : vector<1x8x16xf32> to vector<8x16xf32>
    %38 = tpu.concatenate %35, %37 in 1 : vector<8x16xf32>, vector<8x16xf32> -> vector<8x32xf32>
    %cst = arith.constant dense<0.000000e+00> : vector<8x96xf32>
    %39 = tpu.matmul %38, %0, %cst {dimension_numbers = #tpu.dot_dimension_numbers<[1], [0], [0], [1], [0, 0, 1, 1], [], []>} : vector<8x32xf32>, vector<32x96xf32>, vector<8x96xf32> -> vector<8x96xf32>
    %40 = vector.broadcast %6 : vector<1x96xf32> to vector<8x96xf32>
    %41 = arith.addf %39, %40 : vector<8x96xf32>
    %42 = vector.extract_strided_slice %41 {offsets = [0, 0], sizes = [8, 32], strides = [1, 1]} : vector<8x96xf32> to vector<8x32xf32>
    %43 = vector.extract_strided_slice %41 {offsets = [0, 32], sizes = [8, 32], strides = [1, 1]} : vector<8x96xf32> to vector<8x32xf32>
    %44 = vector.extract_strided_slice %41 {offsets = [0, 64], sizes = [8, 32], strides = [1, 1]} : vector<8x96xf32> to vector<8x32xf32>
    %45 = vector.extract_strided_slice %42 {offsets = [0, 0], sizes = [8, 8], strides = [1, 1]} : vector<8x32xf32> to vector<8x8xf32>
    %46 = vector.extract_strided_slice %43 {offsets = [0, 0], sizes = [8, 8], strides = [1, 1]} : vector<8x32xf32> to vector<8x8xf32>
    %47 = vector.extract_strided_slice %44 {offsets = [0, 0], sizes = [8, 8], strides = [1, 1]} : vector<8x32xf32> to vector<8x8xf32>
    %48 = tpu.transpose %46, [1, 0] : vector<8x8xf32> -> vector<8x8xf32>
    %cst_33 = arith.constant dense<0.000000e+00> : vector<8x8xf32>
    %49 = tpu.matmul %45, %48, %cst_33 {dimension_numbers = #tpu.dot_dimension_numbers<[1], [0], [0], [1], [0, 0, 1, 1], [], []>} : vector<8x8xf32>, vector<8x8xf32>, vector<8x8xf32> -> vector<8x8xf32>
    %cst_34 = arith.constant 0.353553385 : f32
    %50 = vector.broadcast %cst_34 : f32 to vector<8x8xf32>
    %51 = arith.mulf %49, %50 : vector<8x8xf32>
    %cst_35 = arith.constant dense<0xFF800000> : vector<8xf32>
    %52 = vector.multi_reduction <maximumf>, %51, %cst_35 [1] : vector<8x8xf32> to vector<8xf32>
    %53 = vector.shape_cast %52 : vector<8xf32> to vector<8x1xf32>
    %54 = vector.broadcast %53 : vector<8x1xf32> to vector<8x8xf32>
    %55 = arith.subf %51, %54 : vector<8x8xf32>
    %56 = math.exp %55 : vector<8x8xf32>
    %cst_36 = arith.constant dense<0.000000e+00> : vector<8xf32>
    %57 = vector.multi_reduction <add>, %56, %cst_36 [1] : vector<8x8xf32> to vector<8xf32>
    %58 = vector.shape_cast %57 : vector<8xf32> to vector<8x1xf32>
    %59 = tpu.reciprocal %58 {approx = true} : vector<8x1xf32> -> vector<8x1xf32>
    %60 = vector.broadcast %59 : vector<8x1xf32> to vector<8x8xf32>
    %61 = arith.mulf %56, %60 : vector<8x8xf32>
    %cst_37 = arith.constant dense<0.000000e+00> : vector<8x8xf32>
    %62 = tpu.matmul %61, %47, %cst_37 {dimension_numbers = #tpu.dot_dimension_numbers<[1], [0], [0], [1], [0, 0, 1, 1], [], []>} : vector<8x8xf32>, vector<8x8xf32>, vector<8x8xf32> -> vector<8x8xf32>
    %63 = vector.extract_strided_slice %1 {offsets = [0, 0], sizes = [8, 32], strides = [1, 1]} : vector<32x32xf32> to vector<8x32xf32>
    %cst_38 = arith.constant dense<0.000000e+00> : vector<8x32xf32>
    %64 = tpu.matmul %62, %63, %cst_38 {dimension_numbers = #tpu.dot_dimension_numbers<[1], [0], [0], [1], [0, 0, 1, 1], [], []>} : vector<8x8xf32>, vector<8x32xf32>, vector<8x32xf32> -> vector<8x32xf32>
    %65 = vector.extract_strided_slice %42 {offsets = [0, 8], sizes = [8, 8], strides = [1, 1]} : vector<8x32xf32> to vector<8x8xf32>
    %66 = vector.extract_strided_slice %43 {offsets = [0, 8], sizes = [8, 8], strides = [1, 1]} : vector<8x32xf32> to vector<8x8xf32>
    %67 = vector.extract_strided_slice %44 {offsets = [0, 8], sizes = [8, 8], strides = [1, 1]} : vector<8x32xf32> to vector<8x8xf32>
    %68 = tpu.transpose %66, [1, 0] : vector<8x8xf32> -> vector<8x8xf32>
    %cst_39 = arith.constant dense<0.000000e+00> : vector<8x8xf32>
    %69 = tpu.matmul %65, %68, %cst_39 {dimension_numbers = #tpu.dot_dimension_numbers<[1], [0], [0], [1], [0, 0, 1, 1], [], []>} : vector<8x8xf32>, vector<8x8xf32>, vector<8x8xf32> -> vector<8x8xf32>
    %cst_40 = arith.constant 0.353553385 : f32
    %70 = vector.broadcast %cst_40 : f32 to vector<8x8xf32>
    %71 = arith.mulf %69, %70 : vector<8x8xf32>
    %cst_41 = arith.constant dense<0xFF800000> : vector<8xf32>
    %72 = vector.multi_reduction <maximumf>, %71, %cst_41 [1] : vector<8x8xf32> to vector<8xf32>
    %73 = vector.shape_cast %72 : vector<8xf32> to vector<8x1xf32>
    %74 = vector.broadcast %73 : vector<8x1xf32> to vector<8x8xf32>
    %75 = arith.subf %71, %74 : vector<8x8xf32>
    %76 = math.exp %75 : vector<8x8xf32>
    %cst_42 = arith.constant dense<0.000000e+00> : vector<8xf32>
    %77 = vector.multi_reduction <add>, %76, %cst_42 [1] : vector<8x8xf32> to vector<8xf32>
    %78 = vector.shape_cast %77 : vector<8xf32> to vector<8x1xf32>
    %79 = tpu.reciprocal %78 {approx = true} : vector<8x1xf32> -> vector<8x1xf32>
    %80 = vector.broadcast %79 : vector<8x1xf32> to vector<8x8xf32>
    %81 = arith.mulf %76, %80 : vector<8x8xf32>
    %cst_43 = arith.constant dense<0.000000e+00> : vector<8x8xf32>
    %82 = tpu.matmul %81, %67, %cst_43 {dimension_numbers = #tpu.dot_dimension_numbers<[1], [0], [0], [1], [0, 0, 1, 1], [], []>} : vector<8x8xf32>, vector<8x8xf32>, vector<8x8xf32> -> vector<8x8xf32>
    %83 = vector.extract_strided_slice %1 {offsets = [8, 0], sizes = [8, 32], strides = [1, 1]} : vector<32x32xf32> to vector<8x32xf32>
    %cst_44 = arith.constant dense<0.000000e+00> : vector<8x32xf32>
    %84 = tpu.matmul %82, %83, %cst_44 {dimension_numbers = #tpu.dot_dimension_numbers<[1], [0], [0], [1], [0, 0, 1, 1], [], []>} : vector<8x8xf32>, vector<8x32xf32>, vector<8x32xf32> -> vector<8x32xf32>
    %85 = arith.addf %64, %84 : vector<8x32xf32>
    %86 = vector.extract_strided_slice %42 {offsets = [0, 16], sizes = [8, 8], strides = [1, 1]} : vector<8x32xf32> to vector<8x8xf32>
    %87 = vector.extract_strided_slice %43 {offsets = [0, 16], sizes = [8, 8], strides = [1, 1]} : vector<8x32xf32> to vector<8x8xf32>
    %88 = vector.extract_strided_slice %44 {offsets = [0, 16], sizes = [8, 8], strides = [1, 1]} : vector<8x32xf32> to vector<8x8xf32>
    %89 = tpu.transpose %87, [1, 0] : vector<8x8xf32> -> vector<8x8xf32>
    %cst_45 = arith.constant dense<0.000000e+00> : vector<8x8xf32>
    %90 = tpu.matmul %86, %89, %cst_45 {dimension_numbers = #tpu.dot_dimension_numbers<[1], [0], [0], [1], [0, 0, 1, 1], [], []>} : vector<8x8xf32>, vector<8x8xf32>, vector<8x8xf32> -> vector<8x8xf32>
    %cst_46 = arith.constant 0.353553385 : f32
    %91 = vector.broadcast %cst_46 : f32 to vector<8x8xf32>
    %92 = arith.mulf %90, %91 : vector<8x8xf32>
    %cst_47 = arith.constant dense<0xFF800000> : vector<8xf32>
    %93 = vector.multi_reduction <maximumf>, %92, %cst_47 [1] : vector<8x8xf32> to vector<8xf32>
    %94 = vector.shape_cast %93 : vector<8xf32> to vector<8x1xf32>
    %95 = vector.broadcast %94 : vector<8x1xf32> to vector<8x8xf32>
    %96 = arith.subf %92, %95 : vector<8x8xf32>
    %97 = math.exp %96 : vector<8x8xf32>
    %cst_48 = arith.constant dense<0.000000e+00> : vector<8xf32>
    %98 = vector.multi_reduction <add>, %97, %cst_48 [1] : vector<8x8xf32> to vector<8xf32>
    %99 = vector.shape_cast %98 : vector<8xf32> to vector<8x1xf32>
    %100 = tpu.reciprocal %99 {approx = true} : vector<8x1xf32> -> vector<8x1xf32>
    %101 = vector.broadcast %100 : vector<8x1xf32> to vector<8x8xf32>
    %102 = arith.mulf %97, %101 : vector<8x8xf32>
    %cst_49 = arith.constant dense<0.000000e+00> : vector<8x8xf32>
    %103 = tpu.matmul %102, %88, %cst_49 {dimension_numbers = #tpu.dot_dimension_numbers<[1], [0], [0], [1], [0, 0, 1, 1], [], []>} : vector<8x8xf32>, vector<8x8xf32>, vector<8x8xf32> -> vector<8x8xf32>
    %104 = vector.extract_strided_slice %1 {offsets = [16, 0], sizes = [8, 32], strides = [1, 1]} : vector<32x32xf32> to vector<8x32xf32>
    %cst_50 = arith.constant dense<0.000000e+00> : vector<8x32xf32>
    %105 = tpu.matmul %103, %104, %cst_50 {dimension_numbers = #tpu.dot_dimension_numbers<[1], [0], [0], [1], [0, 0, 1, 1], [], []>} : vector<8x8xf32>, vector<8x32xf32>, vector<8x32xf32> -> vector<8x32xf32>
    %106 = arith.addf %85, %105 : vector<8x32xf32>
    %107 = vector.extract_strided_slice %42 {offsets = [0, 24], sizes = [8, 8], strides = [1, 1]} : vector<8x32xf32> to vector<8x8xf32>
    %108 = vector.extract_strided_slice %43 {offsets = [0, 24], sizes = [8, 8], strides = [1, 1]} : vector<8x32xf32> to vector<8x8xf32>
    %109 = vector.extract_strided_slice %44 {offsets = [0, 24], sizes = [8, 8], strides = [1, 1]} : vector<8x32xf32> to vector<8x8xf32>
    %110 = tpu.transpose %108, [1, 0] : vector<8x8xf32> -> vector<8x8xf32>
    %cst_51 = arith.constant dense<0.000000e+00> : vector<8x8xf32>
    %111 = tpu.matmul %107, %110, %cst_51 {dimension_numbers = #tpu.dot_dimension_numbers<[1], [0], [0], [1], [0, 0, 1, 1], [], []>} : vector<8x8xf32>, vector<8x8xf32>, vector<8x8xf32> -> vector<8x8xf32>
    %cst_52 = arith.constant 0.353553385 : f32
    %112 = vector.broadcast %cst_52 : f32 to vector<8x8xf32>
    %113 = arith.mulf %111, %112 : vector<8x8xf32>
    %cst_53 = arith.constant dense<0xFF800000> : vector<8xf32>
    %114 = vector.multi_reduction <maximumf>, %113, %cst_53 [1] : vector<8x8xf32> to vector<8xf32>
    %115 = vector.shape_cast %114 : vector<8xf32> to vector<8x1xf32>
    %116 = vector.broadcast %115 : vector<8x1xf32> to vector<8x8xf32>
    %117 = arith.subf %113, %116 : vector<8x8xf32>
    %118 = math.exp %117 : vector<8x8xf32>
    %cst_54 = arith.constant dense<0.000000e+00> : vector<8xf32>
    %119 = vector.multi_reduction <add>, %118, %cst_54 [1] : vector<8x8xf32> to vector<8xf32>
    %120 = vector.shape_cast %119 : vector<8xf32> to vector<8x1xf32>
    %121 = tpu.reciprocal %120 {approx = true} : vector<8x1xf32> -> vector<8x1xf32>
    %122 = vector.broadcast %121 : vector<8x1xf32> to vector<8x8xf32>
    %123 = arith.mulf %118, %122 : vector<8x8xf32>
    %cst_55 = arith.constant dense<0.000000e+00> : vector<8x8xf32>
    %124 = tpu.matmul %123, %109, %cst_55 {dimension_numbers = #tpu.dot_dimension_numbers<[1], [0], [0], [1], [0, 0, 1, 1], [], []>} : vector<8x8xf32>, vector<8x8xf32>, vector<8x8xf32> -> vector<8x8xf32>
    %125 = vector.extract_strided_slice %1 {offsets = [24, 0], sizes = [8, 32], strides = [1, 1]} : vector<32x32xf32> to vector<8x32xf32>
    %cst_56 = arith.constant dense<0.000000e+00> : vector<8x32xf32>
    %126 = tpu.matmul %124, %125, %cst_56 {dimension_numbers = #tpu.dot_dimension_numbers<[1], [0], [0], [1], [0, 0, 1, 1], [], []>} : vector<8x8xf32>, vector<8x32xf32>, vector<8x32xf32> -> vector<8x32xf32>
    %127 = arith.addf %106, %126 : vector<8x32xf32>
    %128 = vector.broadcast %11 : vector<1x32xf32> to vector<8x32xf32>
    %129 = arith.addf %127, %128 : vector<8x32xf32>
    %130 = arith.addf %38, %129 : vector<8x32xf32>
    %cst_57 = arith.constant dense<0.000000e+00> : vector<8xf32>
    %131 = vector.multi_reduction <add>, %130, %cst_57 [1] : vector<8x32xf32> to vector<8xf32>
    %132 = vector.shape_cast %131 : vector<8xf32> to vector<8x1xf32>
    %cst_58 = arith.constant 3.200000e+01 : f32
    %133 = vector.broadcast %cst_58 : f32 to vector<8x1xf32>
    %134 = arith.divf %132, %133 : vector<8x1xf32>
    %135 = vector.broadcast %134 : vector<8x1xf32> to vector<8x32xf32>
    %136 = arith.subf %130, %135 : vector<8x32xf32>
    %137 = arith.mulf %136, %136 : vector<8x32xf32>
    %cst_59 = arith.constant dense<0.000000e+00> : vector<8xf32>
    %138 = vector.multi_reduction <add>, %137, %cst_59 [1] : vector<8x32xf32> to vector<8xf32>
    %139 = vector.shape_cast %138 : vector<8xf32> to vector<8x1xf32>
    %cst_60 = arith.constant 3.200000e+01 : f32
    %140 = vector.broadcast %cst_60 : f32 to vector<8x1xf32>
    %141 = arith.divf %139, %140 : vector<8x1xf32>
    %142 = vector.broadcast %134 : vector<8x1xf32> to vector<8x32xf32>
    %143 = arith.subf %130, %142 : vector<8x32xf32>
    %cst_61 = arith.constant 9.99999974E-6 : f32
    %144 = vector.broadcast %cst_61 : f32 to vector<8x1xf32>
    %145 = arith.addf %141, %144 : vector<8x1xf32>
    %146 = math.rsqrt %145 : vector<8x1xf32>
    %147 = vector.broadcast %146 : vector<8x1xf32> to vector<8x32xf32>
    %148 = arith.mulf %143, %147 : vector<8x32xf32>
    %149 = vector.broadcast %13 : vector<1x32xf32> to vector<8x32xf32>
    %150 = arith.mulf %148, %149 : vector<8x32xf32>
    %151 = vector.broadcast %14 : vector<1x32xf32> to vector<8x32xf32>
    %152 = arith.addf %150, %151 : vector<8x32xf32>
    %cst_62 = arith.constant dense<0.000000e+00> : vector<8x64xf32>
    %153 = tpu.matmul %152, %2, %cst_62 {dimension_numbers = #tpu.dot_dimension_numbers<[1], [0], [0], [1], [0, 0, 1, 1], [], []>} : vector<8x32xf32>, vector<32x64xf32>, vector<8x64xf32> -> vector<8x64xf32>
    %154 = vector.broadcast %7 : vector<1x64xf32> to vector<8x64xf32>
    %155 = arith.addf %153, %154 : vector<8x64xf32>
    %cst_63 = arith.constant 0.000000e+00 : f32
    %156 = vector.broadcast %cst_63 : f32 to vector<8x64xf32>
    %157 = arith.maximumf %155, %156 : vector<8x64xf32>
    %cst_64 = arith.constant dense<0.000000e+00> : vector<8x32xf32>
    %158 = tpu.matmul %157, %3, %cst_64 {dimension_numbers = #tpu.dot_dimension_numbers<[1], [0], [0], [1], [0, 0, 1, 1], [], []>} : vector<8x64xf32>, vector<64x32xf32>, vector<8x32xf32> -> vector<8x32xf32>
    %159 = vector.broadcast %12 : vector<1x32xf32> to vector<8x32xf32>
    %160 = arith.addf %158, %159 : vector<8x32xf32>
    %161 = arith.addf %152, %160 : vector<8x32xf32>
    %cst_65 = arith.constant dense<0.000000e+00> : vector<8xf32>
    %162 = vector.multi_reduction <add>, %161, %cst_65 [1] : vector<8x32xf32> to vector<8xf32>
    %163 = vector.shape_cast %162 : vector<8xf32> to vector<8x1xf32>
    %cst_66 = arith.constant 3.200000e+01 : f32
    %164 = vector.broadcast %cst_66 : f32 to vector<8x1xf32>
    %165 = arith.divf %163, %164 : vector<8x1xf32>
    %166 = vector.broadcast %165 : vector<8x1xf32> to vector<8x32xf32>
    %167 = arith.subf %161, %166 : vector<8x32xf32>
    %168 = arith.mulf %167, %167 : vector<8x32xf32>
    %cst_67 = arith.constant dense<0.000000e+00> : vector<8xf32>
    %169 = vector.multi_reduction <add>, %168, %cst_67 [1] : vector<8x32xf32> to vector<8xf32>
    %170 = vector.shape_cast %169 : vector<8xf32> to vector<8x1xf32>
    %cst_68 = arith.constant 3.200000e+01 : f32
    %171 = vector.broadcast %cst_68 : f32 to vector<8x1xf32>
    %172 = arith.divf %170, %171 : vector<8x1xf32>
    %173 = vector.broadcast %165 : vector<8x1xf32> to vector<8x32xf32>
    %174 = arith.subf %161, %173 : vector<8x32xf32>
    %cst_69 = arith.constant 9.99999974E-6 : f32
    %175 = vector.broadcast %cst_69 : f32 to vector<8x1xf32>
    %176 = arith.addf %172, %175 : vector<8x1xf32>
    %177 = math.rsqrt %176 : vector<8x1xf32>
    %178 = vector.broadcast %177 : vector<8x1xf32> to vector<8x32xf32>
    %179 = arith.mulf %174, %178 : vector<8x32xf32>
    %180 = vector.broadcast %15 : vector<1x32xf32> to vector<8x32xf32>
    %181 = arith.mulf %179, %180 : vector<8x32xf32>
    %182 = vector.broadcast %16 : vector<1x32xf32> to vector<8x32xf32>
    %183 = arith.addf %181, %182 : vector<8x32xf32>
    %cst_70 = arith.constant dense<0.000000e+00> : vector<8x192xf32>
    %184 = tpu.matmul %183, %4, %cst_70 {dimension_numbers = #tpu.dot_dimension_numbers<[1], [0], [0], [1], [0, 0, 1, 1], [], []>} : vector<8x32xf32>, vector<32x192xf32>, vector<8x192xf32> -> vector<8x192xf32>
    %185 = vector.extract_strided_slice %184 {offsets = [0, 64], sizes = [8, 64], strides = [1, 1]} : vector<8x192xf32> to vector<8x64xf32>
    %186 = vector.extract_strided_slice %184 {offsets = [0, 0], sizes = [8, 64], strides = [1, 1]} : vector<8x192xf32> to vector<8x64xf32>
    %cst_71 = arith.constant dense<0.000000e+00> : vector<8x64xf32>
    %187 = tpu.matmul %28, %186, %cst_71 {dimension_numbers = #tpu.dot_dimension_numbers<[1], [0], [0], [1], [0, 0, 1, 1], [], []>} : vector<8x8xf32>, vector<8x64xf32>, vector<8x64xf32> -> vector<8x64xf32>
    %188 = arith.addf %185, %187 : vector<8x64xf32>
    %189 = vector.extract_strided_slice %184 {offsets = [0, 128], sizes = [8, 64], strides = [1, 1]} : vector<8x192xf32> to vector<8x64xf32>
    %cst_72 = arith.constant dense<0.000000e+00> : vector<8x64xf32>
    %190 = tpu.matmul %33, %189, %cst_72 {dimension_numbers = #tpu.dot_dimension_numbers<[1], [0], [0], [1], [0, 0, 1, 1], [], []>} : vector<8x8xf32>, vector<8x64xf32>, vector<8x64xf32> -> vector<8x64xf32>
    %191 = arith.addf %188, %190 : vector<8x64xf32>
    %192 = vector.broadcast %8 : vector<1x64xf32> to vector<8x64xf32>
    %193 = arith.addf %191, %192 : vector<8x64xf32>
    %cst_73 = arith.constant dense<0.000000e+00> : vector<8x96xf32>
    %194 = tpu.matmul %193, %5, %cst_73 {dimension_numbers = #tpu.dot_dimension_numbers<[1], [0], [0], [1], [0, 0, 1, 1], [], []>} : vector<8x64xf32>, vector<64x96xf32>, vector<8x96xf32> -> vector<8x96xf32>
    %195 = vector.extract_strided_slice %194 {offsets = [0, 32], sizes = [8, 32], strides = [1, 1]} : vector<8x96xf32> to vector<8x32xf32>
    %196 = vector.extract_strided_slice %194 {offsets = [0, 0], sizes = [8, 32], strides = [1, 1]} : vector<8x96xf32> to vector<8x32xf32>
    %cst_74 = arith.constant dense<0.000000e+00> : vector<8x32xf32>
    %197 = tpu.matmul %28, %196, %cst_74 {dimension_numbers = #tpu.dot_dimension_numbers<[1], [0], [0], [1], [0, 0, 1, 1], [], []>} : vector<8x8xf32>, vector<8x32xf32>, vector<8x32xf32> -> vector<8x32xf32>
    %198 = arith.addf %195, %197 : vector<8x32xf32>
    %199 = vector.extract_strided_slice %194 {offsets = [0, 64], sizes = [8, 32], strides = [1, 1]} : vector<8x96xf32> to vector<8x32xf32>
    %cst_75 = arith.constant dense<0.000000e+00> : vector<8x32xf32>
    %200 = tpu.matmul %33, %199, %cst_75 {dimension_numbers = #tpu.dot_dimension_numbers<[1], [0], [0], [1], [0, 0, 1, 1], [], []>} : vector<8x8xf32>, vector<8x32xf32>, vector<8x32xf32> -> vector<8x32xf32>
    %201 = arith.addf %198, %200 : vector<8x32xf32>
    %202 = vector.broadcast %9 : vector<1x32xf32> to vector<8x32xf32>
    %203 = arith.addf %201, %202 : vector<8x32xf32>
    %cst_76 = arith.constant dense<0.000000e+00> : vector<32xf32>
    %204 = vector.multi_reduction <add>, %203, %cst_76 [0] : vector<8x32xf32> to vector<32xf32>
    %205 = vector.shape_cast %204 : vector<32xf32> to vector<1x32xf32>
    %206 = arith.mulf %205, %21 : vector<1x32xf32>
    %cst_77 = arith.constant dense<0.000000e+00> : vector<1xf32>
    %207 = vector.multi_reduction <add>, %206, %cst_77 [1] : vector<1x32xf32> to vector<1xf32>
    %208 = vector.shape_cast %207 : vector<1xf32> to vector<1x1xf32>
    %209 = vector.extract_strided_slice %203 {offsets = [7, 0], sizes = [1, 32], strides = [1, 1]} : vector<8x32xf32> to vector<1x32xf32>
    %210 = arith.mulf %209, %17 : vector<1x32xf32>
    %cst_78 = arith.constant dense<0.000000e+00> : vector<1xf32>
    %211 = vector.multi_reduction <add>, %210, %cst_78 [1] : vector<1x32xf32> to vector<1xf32>
    %212 = vector.shape_cast %211 : vector<1xf32> to vector<1x1xf32>
    %213 = arith.subf %208, %212 : vector<1x1xf32>
    %214 = vector.extract_strided_slice %203 {offsets = [0, 0], sizes = [1, 32], strides = [1, 1]} : vector<8x32xf32> to vector<1x32xf32>
    %215 = arith.mulf %214, %19 : vector<1x32xf32>
    %cst_79 = arith.constant dense<0.000000e+00> : vector<1xf32>
    %216 = vector.multi_reduction <add>, %215, %cst_79 [1] : vector<1x32xf32> to vector<1xf32>
    %217 = vector.shape_cast %216 : vector<1xf32> to vector<1x1xf32>
    %218 = arith.subf %213, %217 : vector<1x1xf32>
    %cst_80 = arith.constant 1.250000e-01 : f32
    %219 = vector.broadcast %cst_80 : f32 to vector<1x1xf32>
    %220 = arith.mulf %218, %219 : vector<1x1xf32>
    %221 = arith.addf %220, %10 : vector<1x1xf32>
    %c0_81 = arith.constant 0 : index
    %c0_82 = arith.constant 0 : index
    %222 = vector.load %arg9[%c0_81, %c0_82] : memref<2x1xf32, #tpu.memory_space<vmem>>, vector<1x1xf32>
    tpu.vector_store %arg9[%c0_81, %c0_82], %221 {strides = array<i32>} : memref<2x1xf32, #tpu.memory_space<vmem>>, vector<1x1xf32>,
    %c1_83 = arith.constant 1 : index
    %c0_84 = arith.constant 0 : index
    %c0_85 = arith.constant 0 : index
    %223 = vector.load %arg0[%c1_83, %c0_84, %c0_85] : memref<2x8x16xf32, #tpu.memory_space<vmem>>, vector<1x8x16xf32>
    %224 = vector.shape_cast %223 : vector<1x8x16xf32> to vector<8x16xf32>
    %c1_86 = arith.constant 1 : index
    %c0_87 = arith.constant 0 : index
    %c0_88 = arith.constant 0 : index
    %225 = vector.load %arg1[%c1_86, %c0_87, %c0_88] : memref<2x8x16xf32, #tpu.memory_space<vmem>>, vector<1x8x16xf32>
    %226 = vector.shape_cast %225 : vector<1x8x16xf32> to vector<8x16xf32>
    %227 = tpu.concatenate %224, %226 in 1 : vector<8x16xf32>, vector<8x16xf32> -> vector<8x32xf32>
    %cst_89 = arith.constant dense<0.000000e+00> : vector<8x96xf32>
    %228 = tpu.matmul %227, %0, %cst_89 {dimension_numbers = #tpu.dot_dimension_numbers<[1], [0], [0], [1], [0, 0, 1, 1], [], []>} : vector<8x32xf32>, vector<32x96xf32>, vector<8x96xf32> -> vector<8x96xf32>
    %229 = vector.broadcast %6 : vector<1x96xf32> to vector<8x96xf32>
    %230 = arith.addf %228, %229 : vector<8x96xf32>
    %231 = vector.extract_strided_slice %230 {offsets = [0, 0], sizes = [8, 32], strides = [1, 1]} : vector<8x96xf32> to vector<8x32xf32>
    %232 = vector.extract_strided_slice %230 {offsets = [0, 32], sizes = [8, 32], strides = [1, 1]} : vector<8x96xf32> to vector<8x32xf32>
    %233 = vector.extract_strided_slice %230 {offsets = [0, 64], sizes = [8, 32], strides = [1, 1]} : vector<8x96xf32> to vector<8x32xf32>
    %234 = vector.extract_strided_slice %231 {offsets = [0, 0], sizes = [8, 8], strides = [1, 1]} : vector<8x32xf32> to vector<8x8xf32>
    %235 = vector.extract_strided_slice %232 {offsets = [0, 0], sizes = [8, 8], strides = [1, 1]} : vector<8x32xf32> to vector<8x8xf32>
    %236 = vector.extract_strided_slice %233 {offsets = [0, 0], sizes = [8, 8], strides = [1, 1]} : vector<8x32xf32> to vector<8x8xf32>
    %237 = tpu.transpose %235, [1, 0] : vector<8x8xf32> -> vector<8x8xf32>
    %cst_90 = arith.constant dense<0.000000e+00> : vector<8x8xf32>
    %238 = tpu.matmul %234, %237, %cst_90 {dimension_numbers = #tpu.dot_dimension_numbers<[1], [0], [0], [1], [0, 0, 1, 1], [], []>} : vector<8x8xf32>, vector<8x8xf32>, vector<8x8xf32> -> vector<8x8xf32>
    %cst_91 = arith.constant 0.353553385 : f32
    %239 = vector.broadcast %cst_91 : f32 to vector<8x8xf32>
    %240 = arith.mulf %238, %239 : vector<8x8xf32>
    %cst_92 = arith.constant dense<0xFF800000> : vector<8xf32>
    %241 = vector.multi_reduction <maximumf>, %240, %cst_92 [1] : vector<8x8xf32> to vector<8xf32>
    %242 = vector.shape_cast %241 : vector<8xf32> to vector<8x1xf32>
    %243 = vector.broadcast %242 : vector<8x1xf32> to vector<8x8xf32>
    %244 = arith.subf %240, %243 : vector<8x8xf32>
    %245 = math.exp %244 : vector<8x8xf32>
    %cst_93 = arith.constant dense<0.000000e+00> : vector<8xf32>
    %246 = vector.multi_reduction <add>, %245, %cst_93 [1] : vector<8x8xf32> to vector<8xf32>
    %247 = vector.shape_cast %246 : vector<8xf32> to vector<8x1xf32>
    %248 = tpu.reciprocal %247 {approx = true} : vector<8x1xf32> -> vector<8x1xf32>
    %249 = vector.broadcast %248 : vector<8x1xf32> to vector<8x8xf32>
    %250 = arith.mulf %245, %249 : vector<8x8xf32>
    %cst_94 = arith.constant dense<0.000000e+00> : vector<8x8xf32>
    %251 = tpu.matmul %250, %236, %cst_94 {dimension_numbers = #tpu.dot_dimension_numbers<[1], [0], [0], [1], [0, 0, 1, 1], [], []>} : vector<8x8xf32>, vector<8x8xf32>, vector<8x8xf32> -> vector<8x8xf32>
    %252 = vector.extract_strided_slice %1 {offsets = [0, 0], sizes = [8, 32], strides = [1, 1]} : vector<32x32xf32> to vector<8x32xf32>
    %cst_95 = arith.constant dense<0.000000e+00> : vector<8x32xf32>
    %253 = tpu.matmul %251, %252, %cst_95 {dimension_numbers = #tpu.dot_dimension_numbers<[1], [0], [0], [1], [0, 0, 1, 1], [], []>} : vector<8x8xf32>, vector<8x32xf32>, vector<8x32xf32> -> vector<8x32xf32>
    %254 = vector.extract_strided_slice %231 {offsets = [0, 8], sizes = [8, 8], strides = [1, 1]} : vector<8x32xf32> to vector<8x8xf32>
    %255 = vector.extract_strided_slice %232 {offsets = [0, 8], sizes = [8, 8], strides = [1, 1]} : vector<8x32xf32> to vector<8x8xf32>
    %256 = vector.extract_strided_slice %233 {offsets = [0, 8], sizes = [8, 8], strides = [1, 1]} : vector<8x32xf32> to vector<8x8xf32>
    %257 = tpu.transpose %255, [1, 0] : vector<8x8xf32> -> vector<8x8xf32>
    %cst_96 = arith.constant dense<0.000000e+00> : vector<8x8xf32>
    %258 = tpu.matmul %254, %257, %cst_96 {dimension_numbers = #tpu.dot_dimension_numbers<[1], [0], [0], [1], [0, 0, 1, 1], [], []>} : vector<8x8xf32>, vector<8x8xf32>, vector<8x8xf32> -> vector<8x8xf32>
    %cst_97 = arith.constant 0.353553385 : f32
    %259 = vector.broadcast %cst_97 : f32 to vector<8x8xf32>
    %260 = arith.mulf %258, %259 : vector<8x8xf32>
    %cst_98 = arith.constant dense<0xFF800000> : vector<8xf32>
    %261 = vector.multi_reduction <maximumf>, %260, %cst_98 [1] : vector<8x8xf32> to vector<8xf32>
    %262 = vector.shape_cast %261 : vector<8xf32> to vector<8x1xf32>
    %263 = vector.broadcast %262 : vector<8x1xf32> to vector<8x8xf32>
    %264 = arith.subf %260, %263 : vector<8x8xf32>
    %265 = math.exp %264 : vector<8x8xf32>
    %cst_99 = arith.constant dense<0.000000e+00> : vector<8xf32>
    %266 = vector.multi_reduction <add>, %265, %cst_99 [1] : vector<8x8xf32> to vector<8xf32>
    %267 = vector.shape_cast %266 : vector<8xf32> to vector<8x1xf32>
    %268 = tpu.reciprocal %267 {approx = true} : vector<8x1xf32> -> vector<8x1xf32>
    %269 = vector.broadcast %268 : vector<8x1xf32> to vector<8x8xf32>
    %270 = arith.mulf %265, %269 : vector<8x8xf32>
    %cst_100 = arith.constant dense<0.000000e+00> : vector<8x8xf32>
    %271 = tpu.matmul %270, %256, %cst_100 {dimension_numbers = #tpu.dot_dimension_numbers<[1], [0], [0], [1], [0, 0, 1, 1], [], []>} : vector<8x8xf32>, vector<8x8xf32>, vector<8x8xf32> -> vector<8x8xf32>
    %272 = vector.extract_strided_slice %1 {offsets = [8, 0], sizes = [8, 32], strides = [1, 1]} : vector<32x32xf32> to vector<8x32xf32>
    %cst_101 = arith.constant dense<0.000000e+00> : vector<8x32xf32>
    %273 = tpu.matmul %271, %272, %cst_101 {dimension_numbers = #tpu.dot_dimension_numbers<[1], [0], [0], [1], [0, 0, 1, 1], [], []>} : vector<8x8xf32>, vector<8x32xf32>, vector<8x32xf32> -> vector<8x32xf32>
    %274 = arith.addf %253, %273 : vector<8x32xf32>
    %275 = vector.extract_strided_slice %231 {offsets = [0, 16], sizes = [8, 8], strides = [1, 1]} : vector<8x32xf32> to vector<8x8xf32>
    %276 = vector.extract_strided_slice %232 {offsets = [0, 16], sizes = [8, 8], strides = [1, 1]} : vector<8x32xf32> to vector<8x8xf32>
    %277 = vector.extract_strided_slice %233 {offsets = [0, 16], sizes = [8, 8], strides = [1, 1]} : vector<8x32xf32> to vector<8x8xf32>
    %278 = tpu.transpose %276, [1, 0] : vector<8x8xf32> -> vector<8x8xf32>
    %cst_102 = arith.constant dense<0.000000e+00> : vector<8x8xf32>
    %279 = tpu.matmul %275, %278, %cst_102 {dimension_numbers = #tpu.dot_dimension_numbers<[1], [0], [0], [1], [0, 0, 1, 1], [], []>} : vector<8x8xf32>, vector<8x8xf32>, vector<8x8xf32> -> vector<8x8xf32>
    %cst_103 = arith.constant 0.353553385 : f32
    %280 = vector.broadcast %cst_103 : f32 to vector<8x8xf32>
    %281 = arith.mulf %279, %280 : vector<8x8xf32>
    %cst_104 = arith.constant dense<0xFF800000> : vector<8xf32>
    %282 = vector.multi_reduction <maximumf>, %281, %cst_104 [1] : vector<8x8xf32> to vector<8xf32>
    %283 = vector.shape_cast %282 : vector<8xf32> to vector<8x1xf32>
    %284 = vector.broadcast %283 : vector<8x1xf32> to vector<8x8xf32>
    %285 = arith.subf %281, %284 : vector<8x8xf32>
    %286 = math.exp %285 : vector<8x8xf32>
    %cst_105 = arith.constant dense<0.000000e+00> : vector<8xf32>
    %287 = vector.multi_reduction <add>, %286, %cst_105 [1] : vector<8x8xf32> to vector<8xf32>
    %288 = vector.shape_cast %287 : vector<8xf32> to vector<8x1xf32>
    %289 = tpu.reciprocal %288 {approx = true} : vector<8x1xf32> -> vector<8x1xf32>
    %290 = vector.broadcast %289 : vector<8x1xf32> to vector<8x8xf32>
    %291 = arith.mulf %286, %290 : vector<8x8xf32>
    %cst_106 = arith.constant dense<0.000000e+00> : vector<8x8xf32>
    %292 = tpu.matmul %291, %277, %cst_106 {dimension_numbers = #tpu.dot_dimension_numbers<[1], [0], [0], [1], [0, 0, 1, 1], [], []>} : vector<8x8xf32>, vector<8x8xf32>, vector<8x8xf32> -> vector<8x8xf32>
    %293 = vector.extract_strided_slice %1 {offsets = [16, 0], sizes = [8, 32], strides = [1, 1]} : vector<32x32xf32> to vector<8x32xf32>
    %cst_107 = arith.constant dense<0.000000e+00> : vector<8x32xf32>
    %294 = tpu.matmul %292, %293, %cst_107 {dimension_numbers = #tpu.dot_dimension_numbers<[1], [0], [0], [1], [0, 0, 1, 1], [], []>} : vector<8x8xf32>, vector<8x32xf32>, vector<8x32xf32> -> vector<8x32xf32>
    %295 = arith.addf %274, %294 : vector<8x32xf32>
    %296 = vector.extract_strided_slice %231 {offsets = [0, 24], sizes = [8, 8], strides = [1, 1]} : vector<8x32xf32> to vector<8x8xf32>
    %297 = vector.extract_strided_slice %232 {offsets = [0, 24], sizes = [8, 8], strides = [1, 1]} : vector<8x32xf32> to vector<8x8xf32>
    %298 = vector.extract_strided_slice %233 {offsets = [0, 24], sizes = [8, 8], strides = [1, 1]} : vector<8x32xf32> to vector<8x8xf32>
    %299 = tpu.transpose %297, [1, 0] : vector<8x8xf32> -> vector<8x8xf32>
    %cst_108 = arith.constant dense<0.000000e+00> : vector<8x8xf32>
    %300 = tpu.matmul %296, %299, %cst_108 {dimension_numbers = #tpu.dot_dimension_numbers<[1], [0], [0], [1], [0, 0, 1, 1], [], []>} : vector<8x8xf32>, vector<8x8xf32>, vector<8x8xf32> -> vector<8x8xf32>
    %cst_109 = arith.constant 0.353553385 : f32
    %301 = vector.broadcast %cst_109 : f32 to vector<8x8xf32>
    %302 = arith.mulf %300, %301 : vector<8x8xf32>
    %cst_110 = arith.constant dense<0xFF800000> : vector<8xf32>
    %303 = vector.multi_reduction <maximumf>, %302, %cst_110 [1] : vector<8x8xf32> to vector<8xf32>
    %304 = vector.shape_cast %303 : vector<8xf32> to vector<8x1xf32>
    %305 = vector.broadcast %304 : vector<8x1xf32> to vector<8x8xf32>
    %306 = arith.subf %302, %305 : vector<8x8xf32>
    %307 = math.exp %306 : vector<8x8xf32>
    %cst_111 = arith.constant dense<0.000000e+00> : vector<8xf32>
    %308 = vector.multi_reduction <add>, %307, %cst_111 [1] : vector<8x8xf32> to vector<8xf32>
    %309 = vector.shape_cast %308 : vector<8xf32> to vector<8x1xf32>
    %310 = tpu.reciprocal %309 {approx = true} : vector<8x1xf32> -> vector<8x1xf32>
    %311 = vector.broadcast %310 : vector<8x1xf32> to vector<8x8xf32>
    %312 = arith.mulf %307, %311 : vector<8x8xf32>
    %cst_112 = arith.constant dense<0.000000e+00> : vector<8x8xf32>
    %313 = tpu.matmul %312, %298, %cst_112 {dimension_numbers = #tpu.dot_dimension_numbers<[1], [0], [0], [1], [0, 0, 1, 1], [], []>} : vector<8x8xf32>, vector<8x8xf32>, vector<8x8xf32> -> vector<8x8xf32>
    %314 = vector.extract_strided_slice %1 {offsets = [24, 0], sizes = [8, 32], strides = [1, 1]} : vector<32x32xf32> to vector<8x32xf32>
    %cst_113 = arith.constant dense<0.000000e+00> : vector<8x32xf32>
    %315 = tpu.matmul %313, %314, %cst_113 {dimension_numbers = #tpu.dot_dimension_numbers<[1], [0], [0], [1], [0, 0, 1, 1], [], []>} : vector<8x8xf32>, vector<8x32xf32>, vector<8x32xf32> -> vector<8x32xf32>
    %316 = arith.addf %295, %315 : vector<8x32xf32>
    %317 = vector.broadcast %11 : vector<1x32xf32> to vector<8x32xf32>
    %318 = arith.addf %316, %317 : vector<8x32xf32>
    %319 = arith.addf %227, %318 : vector<8x32xf32>
    %cst_114 = arith.constant dense<0.000000e+00> : vector<8xf32>
    %320 = vector.multi_reduction <add>, %319, %cst_114 [1] : vector<8x32xf32> to vector<8xf32>
    %321 = vector.shape_cast %320 : vector<8xf32> to vector<8x1xf32>
    %cst_115 = arith.constant 3.200000e+01 : f32
    %322 = vector.broadcast %cst_115 : f32 to vector<8x1xf32>
    %323 = arith.divf %321, %322 : vector<8x1xf32>
    %324 = vector.broadcast %323 : vector<8x1xf32> to vector<8x32xf32>
    %325 = arith.subf %319, %324 : vector<8x32xf32>
    %326 = arith.mulf %325, %325 : vector<8x32xf32>
    %cst_116 = arith.constant dense<0.000000e+00> : vector<8xf32>
    %327 = vector.multi_reduction <add>, %326, %cst_116 [1] : vector<8x32xf32> to vector<8xf32>
    %328 = vector.shape_cast %327 : vector<8xf32> to vector<8x1xf32>
    %cst_117 = arith.constant 3.200000e+01 : f32
    %329 = vector.broadcast %cst_117 : f32 to vector<8x1xf32>
    %330 = arith.divf %328, %329 : vector<8x1xf32>
    %331 = vector.broadcast %323 : vector<8x1xf32> to vector<8x32xf32>
    %332 = arith.subf %319, %331 : vector<8x32xf32>
    %cst_118 = arith.constant 9.99999974E-6 : f32
    %333 = vector.broadcast %cst_118 : f32 to vector<8x1xf32>
    %334 = arith.addf %330, %333 : vector<8x1xf32>
    %335 = math.rsqrt %334 : vector<8x1xf32>
    %336 = vector.broadcast %335 : vector<8x1xf32> to vector<8x32xf32>
    %337 = arith.mulf %332, %336 : vector<8x32xf32>
    %338 = vector.broadcast %13 : vector<1x32xf32> to vector<8x32xf32>
    %339 = arith.mulf %337, %338 : vector<8x32xf32>
    %340 = vector.broadcast %14 : vector<1x32xf32> to vector<8x32xf32>
    %341 = arith.addf %339, %340 : vector<8x32xf32>
    %cst_119 = arith.constant dense<0.000000e+00> : vector<8x64xf32>
    %342 = tpu.matmul %341, %2, %cst_119 {dimension_numbers = #tpu.dot_dimension_numbers<[1], [0], [0], [1], [0, 0, 1, 1], [], []>} : vector<8x32xf32>, vector<32x64xf32>, vector<8x64xf32> -> vector<8x64xf32>
    %343 = vector.broadcast %7 : vector<1x64xf32> to vector<8x64xf32>
    %344 = arith.addf %342, %343 : vector<8x64xf32>
    %cst_120 = arith.constant 0.000000e+00 : f32
    %345 = vector.broadcast %cst_120 : f32 to vector<8x64xf32>
    %346 = arith.maximumf %344, %345 : vector<8x64xf32>
    %cst_121 = arith.constant dense<0.000000e+00> : vector<8x32xf32>
    %347 = tpu.matmul %346, %3, %cst_121 {dimension_numbers = #tpu.dot_dimension_numbers<[1], [0], [0], [1], [0, 0, 1, 1], [], []>} : vector<8x64xf32>, vector<64x32xf32>, vector<8x32xf32> -> vector<8x32xf32>
    %348 = vector.broadcast %12 : vector<1x32xf32> to vector<8x32xf32>
    %349 = arith.addf %347, %348 : vector<8x32xf32>
    %350 = arith.addf %341, %349 : vector<8x32xf32>
    %cst_122 = arith.constant dense<0.000000e+00> : vector<8xf32>
    %351 = vector.multi_reduction <add>, %350, %cst_122 [1] : vector<8x32xf32> to vector<8xf32>
    %352 = vector.shape_cast %351 : vector<8xf32> to vector<8x1xf32>
    %cst_123 = arith.constant 3.200000e+01 : f32
    %353 = vector.broadcast %cst_123 : f32 to vector<8x1xf32>
    %354 = arith.divf %352, %353 : vector<8x1xf32>
    %355 = vector.broadcast %354 : vector<8x1xf32> to vector<8x32xf32>
    %356 = arith.subf %350, %355 : vector<8x32xf32>
    %357 = arith.mulf %356, %356 : vector<8x32xf32>
    %cst_124 = arith.constant dense<0.000000e+00> : vector<8xf32>
    %358 = vector.multi_reduction <add>, %357, %cst_124 [1] : vector<8x32xf32> to vector<8xf32>
    %359 = vector.shape_cast %358 : vector<8xf32> to vector<8x1xf32>
    %cst_125 = arith.constant 3.200000e+01 : f32
    %360 = vector.broadcast %cst_125 : f32 to vector<8x1xf32>
    %361 = arith.divf %359, %360 : vector<8x1xf32>
    %362 = vector.broadcast %354 : vector<8x1xf32> to vector<8x32xf32>
    %363 = arith.subf %350, %362 : vector<8x32xf32>
    %cst_126 = arith.constant 9.99999974E-6 : f32
    %364 = vector.broadcast %cst_126 : f32 to vector<8x1xf32>
    %365 = arith.addf %361, %364 : vector<8x1xf32>
    %366 = math.rsqrt %365 : vector<8x1xf32>
    %367 = vector.broadcast %366 : vector<8x1xf32> to vector<8x32xf32>
    %368 = arith.mulf %363, %367 : vector<8x32xf32>
    %369 = vector.broadcast %15 : vector<1x32xf32> to vector<8x32xf32>
    %370 = arith.mulf %368, %369 : vector<8x32xf32>
    %371 = vector.broadcast %16 : vector<1x32xf32> to vector<8x32xf32>
    %372 = arith.addf %370, %371 : vector<8x32xf32>
    %cst_127 = arith.constant dense<0.000000e+00> : vector<8x192xf32>
    %373 = tpu.matmul %372, %4, %cst_127 {dimension_numbers = #tpu.dot_dimension_numbers<[1], [0], [0], [1], [0, 0, 1, 1], [], []>} : vector<8x32xf32>, vector<32x192xf32>, vector<8x192xf32> -> vector<8x192xf32>
    %374 = vector.extract_strided_slice %373 {offsets = [0, 64], sizes = [8, 64], strides = [1, 1]} : vector<8x192xf32> to vector<8x64xf32>
    %375 = vector.extract_strided_slice %373 {offsets = [0, 0], sizes = [8, 64], strides = [1, 1]} : vector<8x192xf32> to vector<8x64xf32>
    %cst_128 = arith.constant dense<0.000000e+00> : vector<8x64xf32>
    %376 = tpu.matmul %28, %375, %cst_128 {dimension_numbers = #tpu.dot_dimension_numbers<[1], [0], [0], [1], [0, 0, 1, 1], [], []>} : vector<8x8xf32>, vector<8x64xf32>, vector<8x64xf32> -> vector<8x64xf32>
    %377 = arith.addf %374, %376 : vector<8x64xf32>
    %378 = vector.extract_strided_slice %373 {offsets = [0, 128], sizes = [8, 64], strides = [1, 1]} : vector<8x192xf32> to vector<8x64xf32>
    %cst_129 = arith.constant dense<0.000000e+00> : vector<8x64xf32>
    %379 = tpu.matmul %33, %378, %cst_129 {dimension_numbers = #tpu.dot_dimension_numbers<[1], [0], [0], [1], [0, 0, 1, 1], [], []>} : vector<8x8xf32>, vector<8x64xf32>, vector<8x64xf32> -> vector<8x64xf32>
    %380 = arith.addf %377, %379 : vector<8x64xf32>
    %381 = vector.broadcast %8 : vector<1x64xf32> to vector<8x64xf32>
    %382 = arith.addf %380, %381 : vector<8x64xf32>
    %cst_130 = arith.constant dense<0.000000e+00> : vector<8x96xf32>
    %383 = tpu.matmul %382, %5, %cst_130 {dimension_numbers = #tpu.dot_dimension_numbers<[1], [0], [0], [1], [0, 0, 1, 1], [], []>} : vector<8x64xf32>, vector<64x96xf32>, vector<8x96xf32> -> vector<8x96xf32>
    %384 = vector.extract_strided_slice %383 {offsets = [0, 32], sizes = [8, 32], strides = [1, 1]} : vector<8x96xf32> to vector<8x32xf32>
    %385 = vector.extract_strided_slice %383 {offsets = [0, 0], sizes = [8, 32], strides = [1, 1]} : vector<8x96xf32> to vector<8x32xf32>
    %cst_131 = arith.constant dense<0.000000e+00> : vector<8x32xf32>
    %386 = tpu.matmul %28, %385, %cst_131 {dimension_numbers = #tpu.dot_dimension_numbers<[1], [0], [0], [1], [0, 0, 1, 1], [], []>} : vector<8x8xf32>, vector<8x32xf32>, vector<8x32xf32> -> vector<8x32xf32>
    %387 = arith.addf %384, %386 : vector<8x32xf32>
    %388 = vector.extract_strided_slice %383 {offsets = [0, 64], sizes = [8, 32], strides = [1, 1]} : vector<8x96xf32> to vector<8x32xf32>
    %cst_132 = arith.constant dense<0.000000e+00> : vector<8x32xf32>
    %389 = tpu.matmul %33, %388, %cst_132 {dimension_numbers = #tpu.dot_dimension_numbers<[1], [0], [0], [1], [0, 0, 1, 1], [], []>} : vector<8x8xf32>, vector<8x32xf32>, vector<8x32xf32> -> vector<8x32xf32>
    %390 = arith.addf %387, %389 : vector<8x32xf32>
    %391 = vector.broadcast %9 : vector<1x32xf32> to vector<8x32xf32>
    %392 = arith.addf %390, %391 : vector<8x32xf32>
    %cst_133 = arith.constant dense<0.000000e+00> : vector<32xf32>
    %393 = vector.multi_reduction <add>, %392, %cst_133 [0] : vector<8x32xf32> to vector<32xf32>
    %394 = vector.shape_cast %393 : vector<32xf32> to vector<1x32xf32>
    %395 = arith.mulf %394, %21 : vector<1x32xf32>
    %cst_134 = arith.constant dense<0.000000e+00> : vector<1xf32>
    %396 = vector.multi_reduction <add>, %395, %cst_134 [1] : vector<1x32xf32> to vector<1xf32>
    %397 = vector.shape_cast %396 : vector<1xf32> to vector<1x1xf32>
    %398 = vector.extract_strided_slice %392 {offsets = [7, 0], sizes = [1, 32], strides = [1, 1]} : vector<8x32xf32> to vector<1x32xf32>
    %399 = arith.mulf %398, %17 : vector<1x32xf32>
    %cst_135 = arith.constant dense<0.000000e+00> : vector<1xf32>
    %400 = vector.multi_reduction <add>, %399, %cst_135 [1] : vector<1x32xf32> to vector<1xf32>
    %401 = vector.shape_cast %400 : vector<1xf32> to vector<1x1xf32>
    %402 = arith.subf %397, %401 : vector<1x1xf32>
    %403 = vector.extract_strided_slice %392 {offsets = [0, 0], sizes = [1, 32], strides = [1, 1]} : vector<8x32xf32> to vector<1x32xf32>
    %404 = arith.mulf %403, %19 : vector<1x32xf32>
    %cst_136 = arith.constant dense<0.000000e+00> : vector<1xf32>
    %405 = vector.multi_reduction <add>, %404, %cst_136 [1] : vector<1x32xf32> to vector<1xf32>
    %406 = vector.shape_cast %405 : vector<1xf32> to vector<1x1xf32>
    %407 = arith.subf %402, %406 : vector<1x1xf32>
    %cst_137 = arith.constant 1.250000e-01 : f32
    %408 = vector.broadcast %cst_137 : f32 to vector<1x1xf32>
    %409 = arith.mulf %407, %408 : vector<1x1xf32>
    %410 = arith.addf %409, %10 : vector<1x1xf32>
    %c1_138 = arith.constant 1 : index
    %c0_139 = arith.constant 0 : index
    %411 = vector.load %arg9[%c1_138, %c0_139] : memref<2x1xf32, #tpu.memory_space<vmem>>, vector<1x1xf32>
    tpu.vector_store %arg9[%c1_138, %c0_139], %410 {strides = array<i32>} : memref<2x1xf32, #tpu.memory_space<vmem>>, vector<1x1xf32>,
    return
  }
}

</mosaic_0001>

<bundles_post_ra>
// kernel: tpu_custom_call.1
= control target key start
LH: loop header
LB: loop body
LE: loop exit
PB: predicated region body
PF: predicated region fallthrough
CT: control target
= control target key end

     0   :  { %14 = vsyncpa [#allocation3], 0  ;;  %s2490_s0 = inlined_call_operand.hbm [shape: f32[2,8,16], index: 0, kind: input, shape index: {}]   ;;  %s2491_s1 = inlined_call_operand.hbm [shape: f32[2,8,16], index: 1, kind: input, shape index: {}]   ;;  %s2492_s2 = inlined_call_operand.vmem [shape: f32[32,96], index: 2, kind: input, shape index: {}]   ;;  %s2493_s3 = inlined_call_operand.hbm [shape: f32[32,32], index: 3, kind: input, shape index: {}]   ;;  %s2494_s4 = inlined_call_operand.hbm [shape: f32[32,64], index: 4, kind: input, shape index: {}]   ;;  %s2495_s5 = inlined_call_operand.vmem [shape: f32[64,32], index: 5, kind: input, shape index: {}]   ;;  %s2496_s6 = inlined_call_operand.vmem [shape: f32[32,192], index: 6, kind: input, shape index: {}]   ;;  %s2497_s7 = inlined_call_operand.hbm [shape: f32[64,96], index: 7, kind: input, shape index: {}]   ;;  %s2498_s8 = inlined_call_operand.hbm [shape: f32[14,128], index: 8, kind: input, shape index: {}]   ;;  %s2499_s9 = inlined_call_operand.vmem [shape: f32[2,1], index: 9, kind: output, shape index: {}]  }
   0x1   :  { %15 = vsyncpa [#allocation5], 0 }
   0x2   :  { %16 = vsyncpa [#allocation8], 0 }
   0x3   :  { %17 = vsyncpa [#allocation11], 0  ;;  %s35_s11 = sshll.u32 %s2491_s1, 4  ;;  %s1930_s12 = smov [#allocation4]   ;;  %s36_s11 = int_to_ptr.hbm [resolvable:$true] %s35_s11 }
   0x4   :  { %s37_s13 = sshll.u32 %s1930_s12, 4  ;;  %s63_s16 = sshll.u32 %s2494_s4, 4  ;;  %s38_s13 = int_to_ptr.vmem [resolvable:$true] %s37_s13  ;;  %s64_s16 = int_to_ptr.hbm [resolvable:$true] %s63_s16 }
   0x5   :  { %s1931_s17 = smov 128   ;;  %s1932_s18 = smov 8  }
   0x6   :  { %43 = dma.hbm_to_vmem [thread:$0]  %s36_s11, 256, %s38_s13, [#allocation5], %s1931_s17, %s1931_s17, %s1932_s18  }
   0x7   :  { %s1933_s19 = smov [#allocation7]   ;;  %s22_s1 = sshll.u32 %s2490_s0, 4  ;;  %s23_s1 = int_to_ptr.hbm [resolvable:$true] %s22_s1 }
   0x8   :  { %s65_s20 = sshll.u32 %s1933_s19, 4  ;;  %s50_s24 = sshll.u32 %s2493_s3, 4  ;;  %s66_s20 = int_to_ptr.vmem [resolvable:$true] %s65_s20  ;;  %s51_s24 = int_to_ptr.hbm [resolvable:$true] %s50_s24 }
   0x9   :  { %71 = dma.hbm_to_vmem [thread:$0]  %s64_s16, 512, %s66_s20, [#allocation8], %s1931_s17, %s1931_s17, %s1932_s18  }
   0xa   :  { %s1934_s25 = smov [#allocation2]   ;;  %s1935_s27 = smov [#allocation6]  }
   0xb   :  { %s24_s26 = sshll.u32 %s1934_s25, 4  ;;  %s52_s0 = sshll.u32 %s1935_s27, 4  ;;  %s25_s26 = int_to_ptr.vmem [resolvable:$true] %s24_s26  ;;  %s53_s0 = int_to_ptr.vmem [resolvable:$true] %s52_s0 }
   0xc   :  { %30 = dma.hbm_to_vmem [thread:$0]  %s23_s1, 256, %s25_s26, [#allocation3], %s1931_s17, %s1931_s17, %s1932_s18  }
   0xd   :  { %s80_s30 = sshll.u32 %s2497_s7, 4  ;;  %s93_s11 = sshll.u32 %s2498_s8, 4  ;;  %s81_s30 = int_to_ptr.hbm [resolvable:$true] %s80_s30  ;;  %s94_s11 = int_to_ptr.hbm [resolvable:$true] %s93_s11 }
   0xe   :  { %58 = dma.hbm_to_vmem [thread:$0]  %s51_s24, 512, %s53_s0, [#allocation5], %s1931_s17, %s1931_s17, %s1932_s18  }
   0xf   :  { %s1936_s12 = smov [#allocation9]   ;;  %s1937_s14 = smov [#allocation10]  }
  0x10   :  { %s82_s13 = sshll.u32 %s1936_s12, 4  ;;  %s95_s7 = sshll.u32 %s1937_s14, 4  ;;  %s83_s13 = int_to_ptr.vmem [resolvable:$true] %s82_s13  ;;  %s96_s7 = int_to_ptr.vmem [resolvable:$true] %s95_s7 }
  0x11   :  { %88 = dma.hbm_to_vmem [thread:$0]  %s81_s30, 1024, %s83_s13, [#allocation8], %s1931_s17, %s1931_s17, %s1932_s18  }
  0x12   :  { %101 = dma.hbm_to_vmem [thread:$0]  %s94_s11, 256, %s96_s7, [#allocation11], %s1931_s17, %s1931_s17, %s1932_s18  }
  0x13   :  { %1922 = dma.done.wait [#allocation3], 256  }
  0x14   :  { %1923 = vsyncadd [#allocation3], 4294967040 }
  0x15   :  { %1924 = dma.done.wait [#allocation5], 768  }
  0x16   :  { %1925 = vsyncadd [#allocation5], 4294966528 }
  0x17   :  { %1926 = dma.done.wait [#allocation8], 1536  }
  0x18   :  { %1927 = vsyncadd [#allocation8], 4294965760 }
  0x19   :  { %1928 = dma.done.wait [#allocation11], 256  }
  0x1a   :  { %1929 = vsyncadd [#allocation11], 4294967040  ;;  %v191_v0 = vld [vmem:[#allocation4] sm:$0xff]  ;;  %v2042_v1 = vld [vmem:[%s2492_s2 + $0x18] sm:$0xff]  ;;  %s1938_s17 = smov 16   ;;  %vm196_vm0 = vcmask 130048  }
  0x1b   :  { %v2047_v2 = vld [vmem:[%s2492_s2 + $0x10] sm:$0xff]  ;;  %193 = vrot.lane.b32.xlu0 %v191_v0, %s1938_s17  ;;  %215 = vmatpush.msra.mxu0 %v2042_v1  ;;  %v2054_v3 = vld [vmem:[%s2492_s2 + $0x8] sm:$0xff]  ;;  %v2061_v4 = vld [vmem:[%s2492_s2] sm:$0xff]  ;;  %vm199_vm1 = vcmask 261120   ;;  %s1939_s2 = smov 64   ;;  %s1940_s1 = smov 96  }
  0x1c   :  { %v190_v5 = vld [vmem:[#allocation2] sm:$0xff]  ;;  %s1941_s4 = smov 88   ;;  %s1942_s23 = smov 120   ;;  %vm226_vm2 = vcmask 64512   ;;  %v2116_v56 = vld [vmem:[#allocation6 + $0x8] sm:$0xff]  ;;  %vm643_vm7 = vcmask 523264  }
  0x1d   :  { %216 = vmatpush.msra.mxu0 %v2047_v2  ;;  %v2069_v8 = vld [vmem:[#allocation10] ss:$0 sm:$0xff]  ;;  %s1943_s24 = smov 104   ;;  %s1944_s25 = smov 80  }
  0x1e   :  { %s1945_s26 = smov 112   ;;  %s1946_s27 = smov 72   ;;  %v2099_v27 = vld [vmem:[#allocation6] sm:$0xff] }
  0x1f   :  { %217 = vmatpush.msra.mxu0 %v2054_v3  ;;  %s1947_s0 = smov 56   ;;  %s1948_s28 = smov 48  }
  0x20   :  { %s1949_s29 = smov 40  }
  0x21   :  { %218 = vmatpush.msra.mxu0 %v2061_v4 }
  0x8d   :  { %v194_v6 = vpop.permute.xlu0 %193 }
  0x8e   :  { %v2065_v7 = vsel %vm196_vm0, %v190_v5, %v194_v6 }
  0x8f   :  { %1651 = vmatmul.msk.f32.vlgmr.msra.gmra.mxu0 %vm199_vm1, %v2065_v7 }
 0x10c   :  { %v220_v9 = vpop.f32.mrf.mxu0 }
 0x10d   :  { %v2072_v10 = vadd.f32 %v2069_v8, %v220_v9  ;;  %v2124_v9 = vld [vmem:[#allocation6 + $0x10] sm:$0xff] }
 0x10f   :  { %263 = vrot.lane.b32.xlu2 %v2072_v10, %s1939_s2  ;;  %224 = vrot.lane.b32.xlu0 %v2072_v10, %s1940_s1 }
 0x117   :  { %291 = vrot.lane.b32.xlu2 %v2072_v10, %s1941_s4  ;;  %289 = vrot.lane.b32.xlu0 %v2072_v10, %s1942_s23 }
 0x11f   :  { %491 = vrot.lane.b32.xlu2 %v2072_v10, %s1943_s24  ;;  %403 = vrot.lane.b32.xlu0 %v2072_v10, %s1944_s25 }
 0x127   :  { %401 = vrot.lane.b32.xlu2 %v2072_v10, %s1945_s26 }
 0x169   :  { %v264_v11 = vpop.permute.xlu2 %263 }
 0x16a   :  { %284 = vmatpush.msrb.mxu0 %v264_v11 }
 0x171   :  { %v292_v12 = vpop.permute.xlu2 %291 }
 0x172   :  { %1655 = vmatpush.xpose.msk.msra.mxu3 %vm226_vm2, %v292_v12 }
 0x176   :  { %396 = vmatpush.msrb.mxu3 %v2099_v27 }
 0x179   :  { %v492_v30 = vpop.permute.xlu2 %491 }
 0x181   :  { %v225_v13 = vpop.permute.xlu0 %224  ;;  %v402_v32 = vpop.permute.xlu2 %401 }
 0x182   :  { %1652 = vmatpush.xpose.msk.msra.mxu1 %vm226_vm2, %v225_v13 }
 0x185   :  { %1653 = vmatmul.msk.f32.vlgmr.msra.gmra.mxu1 %vm226_vm2, %v2072_v10 }
 0x186   :  { %373 = vmatpush.msrb.mxu1 %v2116_v56 }
 0x188   :  { %485 = vmatpush.msra.mxu1 %v2124_v9 }
 0x189   :  { %v290_v14 = vpop.permute.xlu0 %289 }
 0x18a   :  { %1656 = vmatmul.msk.f32.vlgmr.msra.gmra.mxu3 %vm226_vm2, %v290_v14 }
 0x191   :  { %v404_v15 = vpop.permute.xlu0 %403 }
 0x192   :  { %1660 = vmatpush.xpose.msk.msra.mxu0 %vm226_vm2, %v404_v15 }
 0x202   :  { %v248_v16 = vpop.f32.mrf.mxu1 }
 0x203   :  { %v251_v17 = vmul.f32 0.35355338, %v248_v16  ;;  %v2129_v16 = vld [vmem:[#allocation6 + $0x18] sm:$0xff] }
 0x205   :  { %v252_v18 = vsel %vm226_vm2, %v251_v17, -inf }
 0x206   :  { %253 = vmax.xlane.f32.xlu1 %v252_v18 }
 0x20d   :  { %v314_v19 = vpop.f32.mrf.mxu3 }
 0x20e   :  { %v317_v20 = vmul.f32 0.35355338, %v314_v19 }
 0x210   :  { %v318_v21 = vsel %vm226_vm2, %v317_v20, -inf }
 0x211   :  { %319 = vmax.xlane.f32.xlu0 %v318_v21  ;;  %v2133_v21 = vld [vmem:[#allocation10 + $0x5] ss:$0 sm:$0xff] }
 0x279   :  { %v254_v22 = vpop.xlane.xlu1 %253 }
 0x27a   :  { %v255_v23 = vsub.f32 %v251_v17, %v254_v22 }
 0x27c   :  { %v256_v24 = vmul.f32 1.442695, %v255_v23 }
 0x27e   :  { %1736 = vpow2.f32 %v256_v24 }
 0x284   :  { %v1737_v25 = vpop.eup %1736  ;;  %v320_v34 = vpop.xlane.xlu0 %319 }
 0x285   :  { %v258_v26 = vsel %vm226_vm2, %v1737_v25, 0.0  ;;  %v321_v36 = vsub.f32 %v317_v20, %v320_v34 }
 0x286   :  { %259 = vadd.xlane.f32.xlu1 %v258_v26 }
 0x287   :  { %v322_v37 = vmul.f32 1.442695, %v321_v36 }
 0x29f   :  { %493 = vrot.lane.b32.xlu1 %v2072_v10, %s1946_s27 }
 0x2f9   :  { %v260_v28 = vpop.xlane.xlu1 %259 }
 0x2fa   :  { %1738 = vrcp.f32 %v260_v28  ;;  %v1950_v28 = vmov 32.0  }
 0x2fb   :  { %1740 = vpow2.f32 %v322_v37 }
 0x300   :  { %v1739_v29 = vpop.eup %1738 }
 0x301   :  { %v262_v31 = vmul.f32 %v1739_v29, %v1737_v25  ;;  %v1741_v41 = vpop.eup %1740 }
 0x302   :  { %v324_v42 = vsel %vm226_vm2, %v1741_v41, 0.0 }
 0x303   :  { %1654 = vmatmul.msk.f32.vlgmr.msrb.gmra.mxu0 %vm226_vm2, %v262_v31 }
 0x30b   :  { %1661 = vmatmul.msk.f32.vlgmr.msra.gmra.mxu0 %vm226_vm2, %v402_v32 }
 0x311   :  { %v494_v33 = vpop.permute.xlu1 %493 }
 0x312   :  { %1664 = vmatpush.xpose.msk.msra.mxu3 %vm226_vm2, %v494_v33 }
 0x380   :  { %v286_v35 = vpop.f32.mrf.mxu0 }
 0x381   :  { %1659 = vmatmul.msk.f32.vlgmr.msrb.gmra.mxu3 %vm226_vm2, %v286_v35 }
 0x388   :  { %v426_v38 = vpop.f32.mrf.mxu0 }
 0x389   :  { %v429_v39 = vmul.f32 0.35355338, %v426_v38  ;;  %1665 = vmatmul.msk.f32.vlgmr.msra.gmra.mxu3 %vm226_vm2, %v492_v30 }
 0x38b   :  { %v430_v40 = vsel %vm226_vm2, %v429_v39, -inf }
 0x38c   :  { %431 = vmax.xlane.f32.xlu2 %v430_v40  ;;  %v2145_v40 = vld [vmem:[#allocation7 + $0x10] sm:$0xff] }
 0x394   :  { %325 = vadd.xlane.f32.xlu2 %v324_v42  ;;  %v2150_v42 = vld [vmem:[#allocation7] sm:$0xff] }
 0x3ac   :  { %329 = vrot.lane.b32.xlu2 %v2072_v10, %s1947_s0 }
 0x3ff   :  { %v432_v43 = vpop.xlane.xlu2 %431 }
 0x400   :  { %v433_v44 = vsub.f32 %v429_v39, %v432_v43  ;;  %v2142_v39 = vld [vmem:[#allocation7 + $0x18] sm:$0xff] }
 0x401   :  { %v2157_v43 = vld [vmem:[%s2495_s5 + $0x38] sm:$0xff] }
 0x402   :  { %v434_v45 = vmul.f32 1.442695, %v433_v44  ;;  %v2162_v44 = vld [vmem:[%s2495_s5 + $0x30] sm:$0xff]  ;;  %655 = vmatpush.msrb.mxu3 %v2157_v43 }
 0x404   :  { %1742 = vpow2.f32 %v434_v45  ;;  %v398_v46 = vpop.f32.mrf.mxu3  ;;  %v2168_v45 = vld [vmem:[%s2495_s5 + $0x28] sm:$0xff]  ;;  %656 = vmatpush.msrb.mxu3 %v2162_v44 }
 0x406   :  { %657 = vmatpush.msrb.mxu3 %v2168_v45 }
 0x407   :  { %v326_v47 = vpop.xlane.xlu2 %325 }
 0x408   :  { %1744 = vrcp.f32 %v326_v47 }
 0x40a   :  { %v1743_v48 = vpop.eup %1742 }
 0x40b   :  { %v436_v49 = vsel %vm226_vm2, %v1743_v48, 0.0 }
 0x40c   :  { %v516_v50 = vpop.f32.mrf.mxu3  ;;  %437 = vadd.xlane.f32.xlu0 %v436_v49 }
 0x40d   :  { %v519_v51 = vmul.f32 0.35355338, %v516_v50  ;;  %v2181_v50 = vld [vmem:[%s2495_s5 + $0x18] sm:$0xff] }
 0x40e   :  { %v1745_v52 = vpop.eup %1744 }
 0x40f   :  { %v330_v53 = vpop.permute.xlu2 %329  ;;  %v520_v54 = vsel %vm226_vm2, %v519_v51, -inf  ;;  %v328_v55 = vmul.f32 %v1745_v52, %v1741_v41  ;;  %v2148_v41 = vld [vmem:[#allocation7 + $0x8] sm:$0xff] }
 0x410   :  { %521 = vmax.xlane.f32.xlu1 %v520_v54  ;;  %350 = vmatpush.msra.mxu2 %v330_v53 }
 0x411   :  { %1657 = vmatmul.msk.f32.vlgmr.msra.gmra.mxu2 %vm226_vm2, %v328_v55 }
 0x429   :  { %441 = vrot.lane.b32.xlu1 %v2072_v10, %s1948_s28 }
 0x47f   :  { %v438_v61 = vpop.xlane.xlu0 %437 }
 0x483   :  { %v522_v57 = vpop.xlane.xlu1 %521 }
 0x484   :  { %v523_v58 = vsub.f32 %v519_v51, %v522_v57 }
 0x486   :  { %v524_v59 = vmul.f32 1.442695, %v523_v58  ;;  %v2185_v58 = vld [vmem:[#allocation10 + $0x7] ss:$0 sm:$0xff] }
 0x488   :  { %1746 = vpow2.f32 %v524_v59 }
 0x489   :  { %1748 = vrcp.f32 %v438_v61  ;;  %v2187_v61 = vld [vmem:[#allocation10 + $0x8] ss:$0 sm:$0xff] }
 0x48e   :  { %v1747_v60 = vpop.eup %1746 }
 0x48f   :  { %v526_v62 = vsel %vm226_vm2, %v1747_v60, 0.0  ;;  %v1749_v0 = vpop.eup %1748 }
 0x490   :  { %527 = vadd.xlane.f32.xlu0 %v526_v62  ;;  %v440_v6 = vmul.f32 %v1749_v0, %v1743_v48  ;;  %v2175_v48 = vld [vmem:[%s2495_s5 + $0x20] sm:$0xff]  ;;  %v2195_v0 = vld [vmem:[%s2495_s5 + $0x10] sm:$0xff] }
 0x491   :  { %658 = vmatpush.msrb.mxu3 %v2175_v48 }
 0x493   :  { %659 = vmatpush.msrb.mxu3 %v2181_v50 }
 0x494   :  { %v352_v63 = vpop.f32.mrf.mxu2 }
 0x495   :  { %1658 = vmatmul.msk.f32.vlgmr.msrb.gmra.mxu1 %vm226_vm2, %v352_v63  ;;  %660 = vmatpush.msrb.mxu3 %v2195_v0 }
 0x496   :  { %633 = vmatpush.msrb.mxu1 %v2142_v39 }
 0x498   :  { %634 = vmatpush.msrb.mxu1 %v2145_v40 }
 0x49a   :  { %635 = vmatpush.msrb.mxu1 %v2148_v41 }
 0x49b   :  { %v442_v5 = vpop.permute.xlu1 %441 }
 0x49c   :  { %462 = vmatpush.msrb.mxu2 %v442_v5  ;;  %636 = vmatpush.msrb.mxu1 %v2150_v42  ;;  %v2201_v5 = vld [vmem:[%s2495_s5 + $0x8] sm:$0xff] }
 0x49d   :  { %1662 = vmatmul.msk.f32.vlgmr.msrb.gmra.mxu2 %vm226_vm2, %v440_v6  ;;  %661 = vmatpush.msrb.mxu3 %v2201_v5  ;;  %v2207_v6 = vld [vmem:[%s2495_s5] sm:$0xff] }
 0x49e   :  { %575 = vmatpush.msra.mxu2 %v2129_v16 }
 0x49f   :  { %662 = vmatpush.msrb.mxu3 %v2207_v6 }
 0x4a4   :  { %531 = vrot.lane.b32.xlu0 %v2072_v10, %s1949_s29 }
 0x503   :  { %v528_v11 = vpop.xlane.xlu0 %527 }
 0x504   :  { %1750 = vrcp.f32 %v528_v11  ;;  %v2210_v11 = vld [vmem:[#allocation10 + $0x1] ss:$0 sm:$0xff] }
 0x505   :  { %1752 = vrcp.f32 %v1950_v28  ;;  %v2228_v28 = vld [vmem:[%s2496_s6 + $0x38] sm:$0xff] }
 0x506   :  { %729 = vmatpush.msrb.mxu2 %v2228_v28 }
 0x50a   :  { %v1751_v12 = vpop.eup %1750 }
 0x50b   :  { %v530_v13 = vmul.f32 %v1751_v12, %v1747_v60  ;;  %v1753_v29 = vpop.eup %1752 }
 0x50c   :  { %v588_v30 = vmul.f32 32.0, %v1753_v29  ;;  %vm592_vm3 = vweird.f32 %v1753_v29 }
 0x50e   :  { %v589_v31 = vsub.f32 1.0, %v588_v30  ;;  %v2240_v30 = vld [vmem:[%s2496_s6 + $0x28] sm:$0xff] }
 0x50f   :  { %730 = vmatpush.msrb.mxu2 %v2240_v30 }
 0x510   :  { %v590_v32 = vmul.f32 %v1753_v29, %v589_v31  ;;  %v2247_v31 = vld [vmem:[%s2496_s6 + $0x10] sm:$0xff] }
 0x512   :  { %v375_v17 = vpop.f32.mrf.mxu1  ;;  %v591_v33 = vadd.f32 %v1753_v29, %v590_v32  ;;  %v2252_v32 = vld [vmem:[%s2496_s6 + $0x18] sm:$0xff] }
 0x513   :  { %v399_v19 = vadd.f32 %v398_v46, %v375_v17  ;;  %731 = vmatpush.msrb.mxu2 %v2252_v32 }
 0x514   :  { %v2138_v34 = vsel %vm592_vm3, %v1753_v29, %v591_v33  ;;  %v2235_v29 = vld [vmem:[%s2496_s6 + $0x20] sm:$0xff] }
 0x515   :  { %v2257_v33 = vld [vmem:[%s2496_s6] sm:$0xff] }
 0x516   :  { %v532_v14 = vpop.permute.xlu0 %531 }
 0x517   :  { %552 = vmatpush.msrb.mxu0 %v532_v14 }
 0x518   :  { %1666 = vmatmul.msk.f32.vlgmr.msrb.gmra.mxu0 %vm226_vm2, %v530_v13 }
 0x520   :  { %v464_v15 = vpop.f32.mrf.mxu2 }
 0x521   :  { %1663 = vmatmul.msk.f32.vlgmr.msra.gmra.mxu1 %vm226_vm2, %v464_v15  ;;  %v2214_v15 = vld [vmem:[#allocation10 + $0x6] ss:$0 sm:$0xff] }
 0x595   :  { %v554_v10 = vpop.f32.mrf.mxu0 }
 0x596   :  { %1667 = vmatmul.msk.f32.vlgmr.msra.gmra.mxu2 %vm226_vm2, %v554_v10 }
 0x59e   :  { %v487_v18 = vpop.f32.mrf.mxu1 }
 0x59f   :  { %v490_v20 = vadd.f32 %v487_v18, %v399_v19 }
 0x619   :  { %v577_v22 = vpop.f32.mrf.mxu2 }
 0x61a   :  { %v580_v23 = vadd.f32 %v577_v22, %v490_v20 }
 0x61c   :  { %v582_v24 = vadd.f32 %v2133_v21, %v580_v23 }
 0x61e   :  { %v583_v25 = vadd.f32 %v582_v24, %v2065_v7 }
 0x620   :  { %v584_v26 = vsel %vm199_vm1, %v583_v25, 0.0 }
 0x621   :  { %585 = vadd.xlane.f32.xlu2 %v584_v26  ;;  %v2223_v26 = vld [vmem:[%s2496_s6 + $0x30] sm:$0xff] }
 0x622   :  { %709 = vmatpush.msra.mxu0 %v2223_v26 }
 0x624   :  { %710 = vmatpush.msra.mxu0 %v2235_v29 }
 0x626   :  { %711 = vmatpush.msra.mxu0 %v2247_v31 }
 0x628   :  { %712 = vmatpush.msra.mxu0 %v2257_v33 }
 0x694   :  { %v586_v35 = vpop.xlane.xlu2 %585 }
 0x695   :  { %v594_v36 = vmul.f32 %v2138_v34, %v586_v35  ;;  %v2264_v35 = vld [vmem:[%s2496_s6 + $0x8] sm:$0xff]  ;;  %s1952_s6 = smov 32  }
 0x696   :  { %732 = vmatpush.msrb.mxu2 %v2264_v35 }
 0x697   :  { %v595_v37 = vsub.f32 %v583_v25, %v594_v36 }
 0x699   :  { %v596_v38 = vmul.f32 %v595_v37, %v595_v37 }
 0x69b   :  { %v597_v7 = vsel %vm199_vm1, %v596_v38, 0.0 }
 0x69c   :  { %598 = vadd.xlane.f32.xlu1 %v597_v7 }
 0x70f   :  { %v599_v46 = vpop.xlane.xlu1 %598 }
 0x710   :  { %v600_v47 = vmul.f32 %v599_v46, %v2138_v34 }
 0x712   :  { %v601_v49 = vadd.f32 1e-05, %v600_v47 }
 0x714   :  { %1754 = vrsqrt.f32 %v601_v49  ;;  %vm608_vm5 = vweird.f32 %v601_v49 }
 0x71a   :  { %v1755_v51 = vpop.eup %1754 }
 0x71b   :  { %v603_v52 = vmul.f32 %v1755_v51, %v601_v49  ;;  %vm609_vm4 = vweird.f32 %v1755_v51 }
 0x71c   :  { %vm610_vm6 = vmor %vm608_vm5, %vm609_vm4  ;;  %vm915_vm5 = vcmask 261127  }
 0x71d   :  { %v604_v53 = vmul.f32 %v1755_v51, %v603_v52 }
 0x71f   :  { %v605_v54 = vmul.f32 0.5, %v604_v53  ;;  %v2269_v53 = vld [vmem:[#allocation10 + $0x9] ss:$0 sm:$0xff] }
 0x721   :  { %v606_v55 = vsub.f32 1.5, %v605_v54 }
 0x723   :  { %v607_v57 = vmul.f32 %v1755_v51, %v606_v55 }
 0x725   :  { %v611_v59 = vsel %vm610_vm6, %v1755_v51, %v607_v57  ;;  %v2271_v57 = vld [vmem:[#allocation10 + $0xa] ss:$0 sm:$0xff]  ;;  %vm938_vm6 = vcmask 0  }
 0x726   :  { %v612_v60 = vmul.f32 %v611_v59, %v595_v37 }
 0x728   :  { %v614_v62 = vmul.f32 %v2185_v58, %v612_v60 }
 0x72a   :  { %v616_v63 = vadd.f32 %v2187_v61, %v614_v62  ;;  %v178_v62 = vlaneseq }
 0x72c   :  { %1668 = vmatmul.msk.f32.vlgmr.msrb.gmra.mxu1 %vm199_vm1, %v616_v63 }
 0x7a9   :  { %v638_v12 = vpop.f32.mrf.mxu1 }
 0x7aa   :  { %v639_v13 = vadd.f32 %v2210_v11, %v638_v12  ;;  %v179_v12 = vshrl.u32 %v178_v62, 7 }
 0x7ac   :  { %v641_v14 = vmax.f32 %v639_v13, 0.0 }
 0x7ae   :  { %1669 = vmatmul.msk.f32.vlgmr.msrb.gmra.mxu3 %vm643_vm7, %v641_v14 }
 0x831   :  { %v664_v10 = vpop.f32.mrf.mxu3 }
 0x832   :  { %v665_v17 = vadd.f32 %v2214_v15, %v664_v10  ;;  %v1951_v10 = vmov 0.0  }
 0x834   :  { %v667_v18 = vadd.f32 %v665_v17, %v616_v63  ;;  %v181_v63 = vand.u32 127, %v178_v62 }
 0x836   :  { %v668_v19 = vsel %vm199_vm1, %v667_v18, 0.0  ;;  %v182_v13 = vadd.s32 1, %v181_v63  ;;  %v1649_v14 = vadd.s32 4294967295, %v181_v63 }
 0x837   :  { %669 = vadd.xlane.f32.xlu0 %v668_v19 }
 0x838   :  { %vm183_vm11 = vcmp.eq.s32.totalorder %v179_v12, %v182_v13  ;;  %vm187_vm12 = vcmp.eq.s32.totalorder %v179_v12, %v1649_v14 }
 0x839   :  { %v2277_v17 = vsel %vm183_vm11, 1.0, %v1951_v10  ;;  %v2281_v19 = vsel %vm187_vm12, 1.0, %v1951_v10 }
 0x8aa   :  { %v670_v20 = vpop.xlane.xlu0 %669 }
 0x8ab   :  { %v671_v22 = vmul.f32 %v670_v20, %v2138_v34 }
 0x8ad   :  { %v672_v23 = vsub.f32 %v667_v18, %v671_v22  ;;  %v1734_v22 = vld [vmem:[#allocation10 + $0x2] ss:$0 sm:$0xff] }
 0x8af   :  { %v673_v24 = vmul.f32 %v672_v23, %v672_v23 }
 0x8b1   :  { %v674_v25 = vsel %vm199_vm1, %v673_v24, 0.0 }
 0x8b2   :  { %675 = vadd.xlane.f32.xlu2 %v674_v25  ;;  %v943_v25 = vld [vmem:[#allocation4 + $0x8] sm:$0xff] }
 0x8ca   :  { %795 = vrot.lane.b32.xlu2 %v1734_v22, %s1939_s2 }
 0x925   :  { %v676_v36 = vpop.xlane.xlu2 %675 }
 0x926   :  { %v677_v37 = vmul.f32 %v676_v36, %v2138_v34  ;;  %v2293_v36 = vld [vmem:[#allocation9 + $0x38] sm:$0xff] }
 0x927   :  { %812 = vmatpush.msra.mxu2 %v2293_v36 }
 0x928   :  { %v678_v38 = vadd.f32 1e-05, %v677_v37  ;;  %v2307_v37 = vld [vmem:[#allocation9 + $0x10] sm:$0xff] }
 0x92a   :  { %1756 = vrsqrt.f32 %v678_v38  ;;  %vm685_vm9 = vweird.f32 %v678_v38 }
 0x930   :  { %v1757_v7 = vpop.eup %1756 }
 0x931   :  { %v680_v46 = vmul.f32 %v1757_v7, %v678_v38  ;;  %vm686_vm8 = vweird.f32 %v1757_v7  ;;  %v2310_v38 = vld [vmem:[#allocation9 + $0x8] sm:$0xff] }
 0x932   :  { %vm687_vm10 = vmor %vm685_vm9, %vm686_vm8 }
 0x933   :  { %v681_v47 = vmul.f32 %v1757_v7, %v680_v46 }
 0x935   :  { %v682_v49 = vmul.f32 0.5, %v681_v47 }
 0x937   :  { %v683_v51 = vsub.f32 1.5, %v682_v49 }
 0x939   :  { %v684_v52 = vmul.f32 %v1757_v7, %v683_v51  ;;  %v2317_v51 = vpop.permute.xlu2 %795 }
 0x93b   :  { %v688_v54 = vsel %vm687_vm10, %v1757_v7, %v684_v52  ;;  %v2313_v7 = vld [vmem:[#allocation9] sm:$0xff] }
 0x93c   :  { %v689_v55 = vmul.f32 %v688_v54, %v672_v23 }
 0x93e   :  { %v691_v59 = vmul.f32 %v2269_v53, %v689_v55  ;;  %v941_v55 = vld [vmem:[#allocation2 + $0x8] sm:$0xff] }
 0x940   :  { %v693_v60 = vadd.f32 %v2271_v57, %v691_v59 }
 0x942   :  { %1670 = vmatmul.msk.f32.vlgmr.msra.gmra.mxu0 %vm199_vm1, %v693_v60  ;;  %1671 = vmatmul.msk.f32.vlgmr.msrb.gmra.mxu2 %vm199_vm1, %v693_v60 }
 0x9bf   :  { %v714_v18 = vpop.f32.mrf.mxu0 }
 0x9c0   :  { %755 = vmatpush.msra.mxu1 %v714_v18 }
 0x9c1   :  { %1672 = vmatmul.msk.f32.vlgmr.msra.gmra.mxu1 %vm226_vm2, %v2277_v17 }
 0x9c5   :  { %v734_v20 = vpop.f32.mrf.mxu2 }
 0x9c6   :  { %783 = vmatpush.msrb.mxu0 %v734_v20 }
 0x9c7   :  { %1673 = vmatmul.msk.f32.vlgmr.msrb.gmra.mxu0 %vm226_vm2, %v2281_v19 }
 0x9c8   :  { %964 = vmatpush.msra.mxu0 %v2042_v1  ;;  %v2295_v1 = vld [vmem:[#allocation9 + $0x30] sm:$0xff] }
 0x9c9   :  { %813 = vmatpush.msra.mxu2 %v2295_v1 }
 0x9ca   :  { %965 = vmatpush.msra.mxu0 %v2047_v2  ;;  %v2298_v2 = vld [vmem:[#allocation9 + $0x28] sm:$0xff] }
 0x9cb   :  { %814 = vmatpush.msra.mxu2 %v2298_v2 }
 0x9cc   :  { %966 = vmatpush.msra.mxu0 %v2054_v3  ;;  %v2301_v3 = vld [vmem:[#allocation9 + $0x20] sm:$0xff] }
 0x9cd   :  { %815 = vmatpush.msra.mxu2 %v2301_v3 }
 0x9ce   :  { %967 = vmatpush.msra.mxu0 %v2061_v4  ;;  %v2304_v4 = vld [vmem:[#allocation9 + $0x18] sm:$0xff] }
 0x9cf   :  { %816 = vmatpush.msra.mxu2 %v2304_v4 }
 0x9d1   :  { %817 = vmatpush.msra.mxu2 %v2307_v37 }
 0x9d3   :  { %818 = vmatpush.msra.mxu2 %v2310_v38 }
 0x9d5   :  { %819 = vmatpush.msra.mxu2 %v2313_v7 }
 0xa3e   :  { %v757_v23 = vpop.f32.mrf.mxu1 }
 0xa3f   :  { %761 = vrot.lane.b32.xlu1 %v757_v23, %s1939_s2 }
 0xa44   :  { %v785_v24 = vpop.f32.mrf.mxu0 }
 0xa45   :  { %789 = vrot.lane.b32.xlu0 %v785_v24, %s1939_s2 }
 0xa4d   :  { %945 = vrot.lane.b32.xlu0 %v943_v25, %s1938_s17 }
 0xab1   :  { %v762_v46 = vpop.permute.xlu1 %761 }
 0xab2   :  { %v764_v47 = vadd.f32 %v762_v46, %v714_v18 }
 0xab7   :  { %v790_v49 = vpop.permute.xlu0 %789 }
 0xab8   :  { %v792_v52 = vadd.f32 %v790_v49, %v764_v47 }
 0xaba   :  { %v798_v54 = vadd.f32 %v2317_v51, %v792_v52 }
 0xabc   :  { %800 = vrot.lane.b32.xlu1 %v798_v54, %s1939_s2 }
 0xabf   :  { %v946_v59 = vpop.permute.xlu0 %945 }
 0xac0   :  { %v2322_v60 = vsel %vm196_vm0, %v941_v55, %v946_v59 }
 0xac1   :  { %1677 = vmatmul.msk.f32.vlgmr.msra.gmra.mxu0 %vm199_vm1, %v2322_v60 }
 0xb2e   :  { %v801_v62 = vpop.permute.xlu1 %800 }
 0xb2f   :  { %1674 = vmatmul.msk.f32.vlgmr.msra.gmra.mxu2 %vm643_vm7, %v801_v62 }
 0xb3e   :  { %v969_v63 = vpop.f32.mrf.mxu0 }
 0xb3f   :  { %v2328_v12 = vadd.f32 %v2069_v8, %v969_v63 }
 0xb41   :  { %973 = vrot.lane.b32.xlu2 %v2328_v12, %s1940_s1 }
 0xb9b   :  { %v974_v14 = vpop.permute.xlu2 %973 }
 0xbb2   :  { %v2332_v13 = vpop.f32.mrf.mxu2 }
 0xbb3   :  { %850 = vrot.lane.b32.xlu2 %v2332_v13, %s1939_s2  ;;  %839 = vmatpush.msrb.mxu1 %v2332_v13 }
 0xbb4   :  { %1675 = vmatmul.msk.f32.vlgmr.msrb.gmra.mxu1 %vm226_vm2, %v2277_v17 }
 0xbb5   :  { %1678 = vmatpush.xpose.msk.msra.mxu1 %vm226_vm2, %v974_v14 }
 0xbb9   :  { %1121 = vmatpush.msrb.mxu1 %v2116_v56 }
 0xbbb   :  { %1011 = vrot.lane.b32.xlu2 %v2328_v12, %s1939_s2 }
 0xbbc   :  { %1679 = vmatmul.msk.f32.vlgmr.msra.gmra.mxu1 %vm226_vm2, %v2328_v12 }
 0xbbd   :  { %1233 = vmatpush.msra.mxu1 %v2124_v9 }
 0xbc3   :  { %1039 = vrot.lane.b32.xlu2 %v2328_v12, %s1941_s4 }
 0xbcb   :  { %1037 = vrot.lane.b32.xlu2 %v2328_v12, %s1942_s23 }
 0xbd3   :  { %1241 = vrot.lane.b32.xlu2 %v2328_v12, %s1946_s27 }
 0xbdb   :  { %1149 = vrot.lane.b32.xlu2 %v2328_v12, %s1945_s26 }
 0xc0d   :  { %v851_v8 = vpop.permute.xlu2 %850 }
 0xc0e   :  { %868 = vmatpush.msra.mxu3 %v851_v8 }
 0xc0f   :  { %1676 = vmatmul.msk.f32.vlgmr.msra.gmra.mxu3 %vm226_vm2, %v2281_v19 }
 0xc15   :  { %v1012_v56 = vpop.permute.xlu2 %1011 }
 0xc16   :  { %1032 = vmatpush.msrb.mxu3 %v1012_v56 }
 0xc18   :  { %1144 = vmatpush.msra.mxu3 %v2099_v27 }
 0xc1d   :  { %v1040_v9 = vpop.permute.xlu2 %1039 }
 0xc1e   :  { %1681 = vmatpush.xpose.msk.msrb.mxu0 %vm226_vm2, %v1040_v9 }
 0xc25   :  { %v1038_v10 = vpop.permute.xlu2 %1037 }
 0xc26   :  { %1682 = vmatmul.msk.f32.vlgmr.msrb.gmra.mxu0 %vm226_vm2, %v1038_v10 }
 0xc2d   :  { %v1242_v55 = vpop.permute.xlu2 %1241 }
 0xc31   :  { %v2359_v18 = vpop.f32.mrf.mxu1 }
 0xc35   :  { %v1150_v59 = vpop.permute.xlu2 %1149 }
 0xc39   :  { %v996_v20 = vpop.f32.mrf.mxu1 }
 0xc3a   :  { %v999_v22 = vmul.f32 0.35355338, %v996_v20 }
 0xc3c   :  { %v1000_v23 = vsel %vm226_vm2, %v999_v22, -inf }
 0xc3d   :  { %1001 = vmax.xlane.f32.xlu0 %v1000_v23 }
 0xc51   :  { %1239 = vrot.lane.b32.xlu0 %v2328_v12, %s1943_s24 }
 0xc92   :  { %v2373_v23 = vpop.f32.mrf.mxu3 }
 0xca3   :  { %v1062_v24 = vpop.f32.mrf.mxu0 }
 0xca4   :  { %v1065_v25 = vmul.f32 0.35355338, %v1062_v24 }
 0xca6   :  { %v1066_v27 = vsel %vm226_vm2, %v1065_v25, -inf }
 0xca7   :  { %1067 = vmax.xlane.f32.xlu2 %v1066_v27 }
 0xcb0   :  { %v1002_v46 = vpop.xlane.xlu0 %1001 }
 0xcb1   :  { %v1003_v47 = vsub.f32 %v999_v22, %v1002_v46 }
 0xcb3   :  { %v1004_v49 = vmul.f32 1.442695, %v1003_v47 }
 0xcb5   :  { %1758 = vpow2.f32 %v1004_v49 }
 0xcbb   :  { %v1759_v52 = vpop.eup %1758 }
 0xcbc   :  { %v1006_v54 = vsel %vm226_vm2, %v1759_v52, 0.0 }
 0xcbd   :  { %1007 = vadd.xlane.f32.xlu1 %v1006_v54 }
 0xcd6   :  { %1151 = vrot.lane.b32.xlu1 %v2328_v12, %s1944_s25 }
 0xd1a   :  { %v1068_v62 = vpop.xlane.xlu2 %1067 }
 0xd1b   :  { %v1069_v63 = vsub.f32 %v1065_v25, %v1068_v62  ;;  %v1240_v25 = vpop.permute.xlu0 %1239 }
 0xd1d   :  { %v1070_v14 = vmul.f32 1.442695, %v1069_v63 }
 0xd1f   :  { %1760 = vpow2.f32 %v1070_v14 }
 0xd25   :  { %v1761_v8 = vpop.eup %1760 }
 0xd26   :  { %v1072_v56 = vsel %vm226_vm2, %v1761_v8, 0.0 }
 0xd27   :  { %1073 = vadd.xlane.f32.xlu2 %v1072_v56 }
 0xd30   :  { %v1008_v9 = vpop.xlane.xlu1 %1007 }
 0xd31   :  { %1762 = vrcp.f32 %v1008_v9 }
 0xd37   :  { %v1763_v10 = vpop.eup %1762 }
 0xd38   :  { %v1010_v20 = vmul.f32 %v1763_v10, %v1759_v52 }
 0xd3a   :  { %1680 = vmatmul.msk.f32.vlgmr.msrb.gmra.mxu3 %vm226_vm2, %v1010_v20 }
 0xd3b   :  { %1690 = vmatpush.xpose.msk.msrb.mxu3 %vm226_vm2, %v1242_v55 }
 0xd48   :  { %v1152_v22 = vpop.permute.xlu1 %1151 }
 0xd49   :  { %1686 = vmatpush.xpose.msk.msra.mxu0 %vm226_vm2, %v1152_v22 }
 0xd4c   :  { %1687 = vmatmul.msk.f32.vlgmr.msra.gmra.mxu0 %vm226_vm2, %v1150_v59 }
 0xdbd   :  { %v1034_v24 = vpop.f32.mrf.mxu3 }
 0xdbe   :  { %1685 = vmatmul.msk.f32.vlgmr.msra.gmra.mxu3 %vm226_vm2, %v1034_v24 }
 0xdbf   :  { %1390 = vmatpush.msra.mxu3 %v2157_v43 }
 0xdc1   :  { %1391 = vmatpush.msra.mxu3 %v2162_v44 }
 0xdc3   :  { %1392 = vmatpush.msra.mxu3 %v2168_v45 }
 0xdc5   :  { %1393 = vmatpush.msra.mxu3 %v2175_v48 }
 0xdc6   :  { %1691 = vmatmul.msk.f32.vlgmr.msrb.gmra.mxu3 %vm226_vm2, %v1240_v25 }
 0xdc7   :  { %1394 = vmatpush.msra.mxu3 %v2181_v50  ;;  %v1074_v50 = vpop.xlane.xlu2 %1073 }
 0xdc9   :  { %v1174_v27 = vpop.f32.mrf.mxu0  ;;  %1395 = vmatpush.msra.mxu3 %v2195_v0 }
 0xdca   :  { %v1177_v46 = vmul.f32 0.35355338, %v1174_v27 }
 0xdcb   :  { %1396 = vmatpush.msra.mxu3 %v2201_v5 }
 0xdcc   :  { %v1178_v47 = vsel %vm226_vm2, %v1177_v46, -inf }
 0xdcd   :  { %1179 = vmax.xlane.f32.xlu0 %v1178_v47  ;;  %1397 = vmatpush.msra.mxu3 %v2207_v6 }
 0xde1   :  { %1077 = vrot.lane.b32.xlu0 %v2328_v12, %s1947_s0 }
 0xe40   :  { %v1180_v43 = vpop.xlane.xlu0 %1179 }
 0xe41   :  { %v1181_v44 = vsub.f32 %v1177_v46, %v1180_v43  ;;  %v2388_v45 = vpop.f32.mrf.mxu3 }
 0xe43   :  { %v1182_v48 = vmul.f32 1.442695, %v1181_v44 }
 0xe45   :  { %1764 = vpow2.f32 %v1182_v48 }
 0xe46   :  { %1766 = vrcp.f32 %v1074_v50 }
 0xe49   :  { %v1264_v49 = vpop.f32.mrf.mxu3 }
 0xe4a   :  { %v1267_v0 = vmul.f32 0.35355338, %v1264_v49 }
 0xe4b   :  { %v1765_v52 = vpop.eup %1764 }
 0xe4c   :  { %v1268_v5 = vsel %vm226_vm2, %v1267_v0, -inf  ;;  %v1184_v54 = vsel %vm226_vm2, %v1765_v52, 0.0  ;;  %v1767_v6 = vpop.eup %1766 }
 0xe4d   :  { %1269 = vmax.xlane.f32.xlu1 %v1268_v5  ;;  %1185 = vadd.xlane.f32.xlu2 %v1184_v54  ;;  %v1076_v55 = vmul.f32 %v1767_v6, %v1761_v8 }
 0xe53   :  { %v1078_v59 = vpop.permute.xlu0 %1077 }
 0xe54   :  { %1098 = vmatpush.msrb.mxu2 %v1078_v59 }
 0xe55   :  { %1683 = vmatmul.msk.f32.vlgmr.msrb.gmra.mxu2 %vm226_vm2, %v1076_v55 }
 0xe66   :  { %1189 = vrot.lane.b32.xlu1 %v2328_v12, %s1948_s28 }
 0xec0   :  { %v1270_v62 = vpop.xlane.xlu1 %1269  ;;  %v1186_v9 = vpop.xlane.xlu2 %1185 }
 0xec1   :  { %v1271_v63 = vsub.f32 %v1267_v0, %v1270_v62 }
 0xec3   :  { %v1272_v14 = vmul.f32 1.442695, %v1271_v63 }
 0xec5   :  { %1768 = vpow2.f32 %v1272_v14 }
 0xec6   :  { %1770 = vrcp.f32 %v1186_v9 }
 0xecb   :  { %v1769_v56 = vpop.eup %1768 }
 0xecc   :  { %v1274_v10 = vsel %vm226_vm2, %v1769_v56, 0.0  ;;  %v1771_v20 = vpop.eup %1770 }
 0xecd   :  { %1275 = vadd.xlane.f32.xlu2 %v1274_v10  ;;  %v1188_v22 = vmul.f32 %v1771_v20, %v1765_v52 }
 0xed8   :  { %v1190_v8 = vpop.permute.xlu1 %1189  ;;  %v1100_v24 = vpop.f32.mrf.mxu2 }
 0xed9   :  { %1684 = vmatmul.msk.f32.vlgmr.msrb.gmra.mxu1 %vm226_vm2, %v1100_v24  ;;  %1210 = vmatpush.msra.mxu2 %v1190_v8 }
 0xeda   :  { %1688 = vmatmul.msk.f32.vlgmr.msra.gmra.mxu2 %vm226_vm2, %v1188_v22  ;;  %1370 = vmatpush.msrb.mxu1 %v2142_v39 }
 0xedb   :  { %1323 = vmatpush.msrb.mxu2 %v2129_v16 }
 0xedc   :  { %1371 = vmatpush.msrb.mxu1 %v2145_v40 }
 0xedd   :  { %1462 = vmatpush.msra.mxu2 %v2228_v28 }
 0xede   :  { %1372 = vmatpush.msrb.mxu1 %v2148_v41 }
 0xedf   :  { %1463 = vmatpush.msra.mxu2 %v2240_v30 }
 0xee0   :  { %1373 = vmatpush.msrb.mxu1 %v2150_v42 }
 0xee1   :  { %1464 = vmatpush.msra.mxu2 %v2252_v32 }
 0xee3   :  { %1465 = vmatpush.msra.mxu2 %v2264_v35 }
 0xee5   :  { %1279 = vrot.lane.b32.xlu2 %v2328_v12, %s1949_s29 }
 0xf40   :  { %v1276_v39 = vpop.xlane.xlu2 %1275 }
 0xf41   :  { %1772 = vrcp.f32 %v1276_v39 }
 0xf47   :  { %v1773_v16 = vpop.eup %1772 }
 0xf48   :  { %v1278_v25 = vmul.f32 %v1773_v16, %v1769_v56  ;;  %v1280_v40 = vpop.permute.xlu2 %1279 }
 0xf49   :  { %1300 = vmatpush.msrb.mxu0 %v1280_v40 }
 0xf4a   :  { %1692 = vmatmul.msk.f32.vlgmr.msrb.gmra.mxu0 %vm226_vm2, %v1278_v25 }
 0xf4b   :  { %1442 = vmatpush.msra.mxu0 %v2223_v26 }
 0xf4d   :  { %1443 = vmatpush.msra.mxu0 %v2235_v29 }
 0xf4f   :  { %1444 = vmatpush.msra.mxu0 %v2247_v31 }
 0xf51   :  { %1445 = vmatpush.msra.mxu0 %v2257_v33 }
 0xf56   :  { %v1123_v26 = vpop.f32.mrf.mxu1 }
 0xf57   :  { %v1147_v29 = vadd.f32 %v2388_v45, %v1123_v26 }
 0xf5d   :  { %v1212_v41 = vpop.f32.mrf.mxu2 }
 0xf5e   :  { %1689 = vmatmul.msk.f32.vlgmr.msra.gmra.mxu1 %vm226_vm2, %v1212_v41 }
 0xfc7   :  { %v1302_v42 = vpop.f32.mrf.mxu0 }
 0xfc8   :  { %1693 = vmatmul.msk.f32.vlgmr.msrb.gmra.mxu2 %vm226_vm2, %v1302_v42 }
 0xfc9   :  { %1534 = vmatpush.msrb.mxu2 %v2293_v36 }
 0xfcb   :  { %1535 = vmatpush.msrb.mxu2 %v2295_v1 }
 0xfcd   :  { %1536 = vmatpush.msrb.mxu2 %v2298_v2 }
 0xfcf   :  { %1537 = vmatpush.msrb.mxu2 %v2301_v3 }
 0xfd1   :  { %1538 = vmatpush.msrb.mxu2 %v2304_v4 }
 0xfd3   :  { %1539 = vmatpush.msrb.mxu2 %v2307_v37 }
 0xfd5   :  { %1540 = vmatpush.msrb.mxu2 %v2310_v38 }
 0xfd7   :  { %1541 = vmatpush.msrb.mxu2 %v2313_v7 }
 0xfdb   :  { %v1235_v28 = vpop.f32.mrf.mxu1 }
 0xfdc   :  { %v1238_v30 = vadd.f32 %v1235_v28, %v1147_v29 }
0x104b   :  { %v1325_v31 = vpop.f32.mrf.mxu2 }
0x104c   :  { %v1328_v32 = vadd.f32 %v1325_v31, %v1238_v30  ;;  %v1735_v31 = vld [vmem:[#allocation10 + $0x3] ss:$0 sm:$0xff] }
0x104e   :  { %v1329_v33 = vadd.f32 %v2133_v21, %v1328_v32 }
0x1050   :  { %v1330_v35 = vadd.f32 %v1329_v33, %v2322_v60  ;;  %v174_v33 = vld [vmem:[#allocation10 + $0xc] sm:$0x1] }
0x1052   :  { %v1331_v36 = vsel %vm199_vm1, %v1330_v35, 0.0 }
0x1053   :  { %1332 = vadd.xlane.f32.xlu0 %v1331_v36 }
0x10c6   :  { %v1333_v1 = vpop.xlane.xlu0 %1332 }
0x10c7   :  { %v1334_v2 = vmul.f32 %v1333_v1, %v2138_v34 }
0x10c9   :  { %v1335_v3 = vsub.f32 %v1330_v35, %v1334_v2  ;;  %v175_v35 = vld [vmem:[#allocation10 + $0xd] sm:$0x1] }
0x10cb   :  { %v1336_v4 = vmul.f32 %v1335_v3, %v1335_v3 }
0x10cd   :  { %v1337_v37 = vsel %vm199_vm1, %v1336_v4, 0.0 }
0x10ce   :  { %1338 = vadd.xlane.f32.xlu1 %v1337_v37 }
0x1141   :  { %v1339_v38 = vpop.xlane.xlu1 %1338 }
0x1142   :  { %v1340_v7 = vmul.f32 %v1339_v38, %v2138_v34 }
0x1144   :  { %v1341_v12 = vadd.f32 1e-05, %v1340_v7 }
0x1146   :  { %1774 = vrsqrt.f32 %v1341_v12  ;;  %vm1348_vm14 = vweird.f32 %v1341_v12 }
0x114c   :  { %v1775_v27 = vpop.eup %1774 }
0x114d   :  { %v1343_v21 = vmul.f32 %v1775_v27, %v1341_v12  ;;  %vm1349_vm13 = vweird.f32 %v1775_v27 }
0x114e   :  { %vm1350_vm15 = vmor %vm1348_vm14, %vm1349_vm13 }
0x114f   :  { %v1344_v46 = vmul.f32 %v1775_v27, %v1343_v21 }
0x1151   :  { %v1345_v60 = vmul.f32 0.5, %v1344_v46 }
0x1153   :  { %v1346_v47 = vsub.f32 1.5, %v1345_v60 }
0x1155   :  { %v1347_v43 = vmul.f32 %v1775_v27, %v1346_v47 }
0x1157   :  { %v1351_v44 = vsel %vm1350_vm15, %v1775_v27, %v1347_v43 }
0x1158   :  { %v1352_v45 = vmul.f32 %v1351_v44, %v1335_v3 }
0x115a   :  { %v1353_v48 = vmul.f32 %v2185_v58, %v1352_v45 }
0x115c   :  { %v1354_v50 = vadd.f32 %v2187_v61, %v1353_v48 }
0x115e   :  { %1694 = vmatmul.msk.f32.vlgmr.msrb.gmra.mxu1 %vm199_vm1, %v1354_v50 }
0x11db   :  { %v1375_v49 = vpop.f32.mrf.mxu1 }
0x11dc   :  { %v1376_v0 = vadd.f32 %v2210_v11, %v1375_v49 }
0x11de   :  { %v1378_v52 = vmax.f32 %v1376_v0, 0.0 }
0x11e0   :  { %1695 = vmatmul.msk.f32.vlgmr.msra.gmra.mxu3 %vm643_vm7, %v1378_v52 }
0x1263   :  { %v1399_v5 = vpop.f32.mrf.mxu3 }
0x1264   :  { %v1400_v54 = vadd.f32 %v2214_v15, %v1399_v5 }
0x1266   :  { %v1402_v6 = vadd.f32 %v1400_v54, %v1354_v50 }
0x1268   :  { %v1403_v55 = vsel %vm199_vm1, %v1402_v6, 0.0 }
0x1269   :  { %1404 = vadd.xlane.f32.xlu2 %v1403_v55 }
0x12dc   :  { %v1405_v59 = vpop.xlane.xlu2 %1404 }
0x12dd   :  { %v1406_v58 = vmul.f32 %v1405_v59, %v2138_v34 }
0x12df   :  { %v1407_v62 = vsub.f32 %v1402_v6, %v1406_v58 }
0x12e1   :  { %v1408_v61 = vmul.f32 %v1407_v62, %v1407_v62 }
0x12e3   :  { %v1409_v63 = vsel %vm199_vm1, %v1408_v61, 0.0 }
0x12e4   :  { %1410 = vadd.xlane.f32.xlu0 %v1409_v63 }
0x1357   :  { %v1411_v14 = vpop.xlane.xlu0 %1410 }
0x1358   :  { %v1412_v11 = vmul.f32 %v1411_v14, %v2138_v34 }
0x135a   :  { %v1413_v56 = vadd.f32 1e-05, %v1412_v11 }
0x135c   :  { %1776 = vrsqrt.f32 %v1413_v56  ;;  %vm1420_vm3 = vweird.f32 %v1413_v56 }
0x1362   :  { %v1777_v9 = vpop.eup %1776 }
0x1363   :  { %v1415_v10 = vmul.f32 %v1777_v9, %v1413_v56  ;;  %vm1421_vm0 = vweird.f32 %v1777_v9 }
0x1364   :  { %vm1422_vm4 = vmor %vm1420_vm3, %vm1421_vm0 }
0x1365   :  { %v1416_v15 = vmul.f32 %v1777_v9, %v1415_v10 }
0x1367   :  { %v1417_v20 = vmul.f32 0.5, %v1416_v15 }
0x1369   :  { %v1418_v22 = vsub.f32 1.5, %v1417_v20 }
0x136b   :  { %v1419_v8 = vmul.f32 %v1777_v9, %v1418_v22 }
0x136d   :  { %v1423_v24 = vsel %vm1422_vm4, %v1777_v9, %v1419_v8 }
0x136e   :  { %v1424_v39 = vmul.f32 %v1423_v24, %v1407_v62 }
0x1370   :  { %v1425_v16 = vmul.f32 %v2269_v53, %v1424_v39 }
0x1372   :  { %v1426_v25 = vadd.f32 %v2271_v57, %v1425_v16 }
0x1374   :  { %1696 = vmatmul.msk.f32.vlgmr.msra.gmra.mxu0 %vm199_vm1, %v1426_v25  ;;  %1697 = vmatmul.msk.f32.vlgmr.msra.gmra.mxu2 %vm199_vm1, %v1426_v25  ;;  %vm884_vm1 = vcmask 523520  }
0x13f1   :  { %v1447_v34 = vpop.f32.mrf.mxu0 }
0x13f2   :  { %1485 = vmatpush.msra.mxu1 %v1447_v34 }
0x13f3   :  { %1698 = vmatmul.msk.f32.vlgmr.msra.gmra.mxu1 %vm226_vm2, %v2277_v17 }
0x13f7   :  { %v1467_v40 = vpop.f32.mrf.mxu2 }
0x13f8   :  { %1510 = vmatpush.msrb.mxu0 %v1467_v40 }
0x13f9   :  { %1699 = vmatmul.msk.f32.vlgmr.msrb.gmra.mxu0 %vm226_vm2, %v2281_v19 }
0x1470   :  { %v1487_v41 = vpop.f32.mrf.mxu1 }
0x1471   :  { %1491 = vrot.lane.b32.xlu0 %v1487_v41, %s1939_s2 }
0x1476   :  { %v1512_v53 = vpop.f32.mrf.mxu0 }
0x1477   :  { %1516 = vrot.lane.b32.xlu1 %v1512_v53, %s1939_s2 }
0x147f   :  { %874 = vrot.lane.b32.xlu1 %v2373_v23, %s1952_s6  ;;  %v173_v23 = vld [vmem:[#allocation10 + $0xb] sm:$0x1] }
0x1480   :  { %v906_v27 = vrot.slane %v173_v23, 1 }
0x14e3   :  { %v1492_v57 = vpop.permute.xlu0 %1491 }
0x14e4   :  { %v1494_v42 = vadd.f32 %v1492_v57, %v1447_v34 }
0x14e9   :  { %v1517_v26 = vpop.permute.xlu1 %1516 }
0x14ea   :  { %v1519_v28 = vadd.f32 %v1517_v26, %v1494_v42 }
0x14ec   :  { %v1520_v29 = vadd.f32 %v1519_v28, %v2317_v51  ;;  %v176_v51 = vadd.f32 %v174_v33, %v173_v23 }
0x14ee   :  { %1522 = vrot.lane.b32.xlu2 %v1520_v29, %s1939_s2  ;;  %v177_v36 = vadd.f32 %v176_v51, %v175_v35 }
0x14f1   :  { %v875_v4 = vpop.permute.xlu1 %874 }
0x14f6   :  { %880 = vrot.lane.b32.xlu2 %v1735_v31, %s1952_s6 }
0x1548   :  { %v1523_v30 = vpop.permute.xlu2 %1522 }
0x1549   :  { %1700 = vmatmul.msk.f32.vlgmr.msrb.gmra.mxu2 %vm643_vm7, %v1523_v30  ;;  %v166_v30 = vld [vmem:[#allocation10 + $0x4] sm:$0x1] }
0x15cc   :  { %v1543_v32 = vpop.f32.mrf.mxu2 }
0x15cd   :  { %1572 = vrot.lane.b32.xlu0 %v1543_v32, %s1939_s2  ;;  %1561 = vmatpush.msrb.mxu1 %v1543_v32 }
0x15ce   :  { %1701 = vmatmul.msk.f32.vlgmr.msrb.gmra.mxu1 %vm226_vm2, %v2277_v17  ;;  %v881_v17 = vpop.permute.xlu2 %880 }
0x15d5   :  { %845 = vrot.lane.b32.xlu0 %v2359_v18, %s1952_s6 }
0x15dd   :  { %893 = vrot.lane.b32.xlu0 %v177_v36, %s1952_s6 }
0x163f   :  { %v1573_v1 = vpop.permute.xlu0 %1572 }
0x1640   :  { %1590 = vmatpush.msrb.mxu3 %v1573_v1 }
0x1641   :  { %1702 = vmatmul.msk.f32.vlgmr.msrb.gmra.mxu3 %vm226_vm2, %v2281_v19  ;;  %vm901_vm2 = vcmask 253952  }
0x1647   :  { %v846_v2 = vpop.permute.xlu0 %845 }
0x1648   :  { %v848_v3 = vadd.f32 %v846_v2, %v2332_v13 }
0x164a   :  { %v877_v37 = vadd.f32 %v875_v4, %v848_v3 }
0x164b   :  { %v1563_v38 = vpop.f32.mrf.mxu1 }
0x164c   :  { %v883_v7 = vadd.f32 %v881_v17, %v877_v37  ;;  %1567 = vrot.lane.b32.xlu0 %v1563_v38, %s1952_s6 }
0x164e   :  { %v885_v18 = vsel %vm884_vm1, %v883_v7, 0.0 }
0x164f   :  { %v886_v12 = vrot.slane %v885_v18, 4  ;;  %v894_v47 = vpop.permute.xlu0 %893 }
0x1651   :  { %v887_v21 = vadd.f32 %v886_v12, %v885_v18 }
0x1653   :  { %v888_v46 = vrot.slane %v887_v21, 2 }
0x1654   :  { %907 = vrot.lane.b32.xlu0 %v906_v27, %s1952_s6 }
0x1655   :  { %v889_v19 = vadd.f32 %v888_v46, %v887_v21 }
0x1657   :  { %v890_v60 = vrot.slane %v889_v19, 1 }
0x1659   :  { %v891_v13 = vadd.f32 %v890_v60, %v889_v19 }
0x165b   :  { %v896_v43 = vmul.f32 %v894_v47, %v891_v13 }
0x165d   :  { %898 = vrot.lane.b32.xlu1 %v896_v43, %s1940_s1 }
0x16be   :  { %v1568_v44 = vpop.permute.xlu0 %1567 }
0x16bf   :  { %v1570_v52 = vadd.f32 %v1568_v44, %v1543_v32 }
0x16c4   :  { %v1592_v45 = vpop.f32.mrf.mxu3 }
0x16c5   :  { %1596 = vrot.lane.b32.xlu1 %v1592_v45, %s1952_s6 }
0x16c6   :  { %v908_v48 = vpop.permute.xlu0 %907 }
0x16c7   :  { %v910_v50 = vmul.f32 %v908_v48, %v883_v7 }
0x16cd   :  { %912 = vrot.lane.b32.xlu1 %v910_v50, %s1940_s1 }
0x16cf   :  { %v899_v49 = vpop.permute.xlu1 %898 }
0x16d0   :  { %v902_v0 = vsel %vm901_vm2, %v899_v49, 0.0 }
0x16d1   :  { %903 = vadd.xlane.f32.xlu2 %v902_v0 }
0x16d5   :  { %924 = vrot.lane.b32.xlu1 %v175_v35, %s1952_s6 }
0x1737   :  { %v1597_v5 = vpop.permute.xlu1 %1596 }
0x1738   :  { %v1599_v54 = vadd.f32 %v1597_v5, %v1570_v52 }
0x173a   :  { %v1600_v6 = vadd.f32 %v1599_v54, %v881_v17 }
0x173c   :  { %v1601_v55 = vsel %vm884_vm1, %v1600_v6, 0.0  ;;  %v1616_v22 = vmul.f32 %v1600_v6, %v908_v48 }
0x173d   :  { %v1602_v59 = vrot.slane %v1601_v55, 4 }
0x173f   :  { %v1603_v58 = vadd.f32 %v1602_v59, %v1601_v55  ;;  %v913_v62 = vpop.permute.xlu1 %912 }
0x1740   :  { %v916_v61 = vsel %vm915_vm5, %v913_v62, 0.0 }
0x1741   :  { %917 = vadd.xlane.f32.xlu0 %v916_v61  ;;  %v1604_v63 = vrot.slane %v1603_v58, 2 }
0x1743   :  { %v1605_v14 = vadd.f32 %v1604_v63, %v1603_v58 }
0x1744   :  { %v904_v8 = vpop.xlane.xlu2 %903 }
0x1745   :  { %v1606_v11 = vrot.slane %v1605_v14, 1 }
0x1747   :  { %v925_v56 = vpop.permute.xlu1 %924  ;;  %v1607_v9 = vadd.f32 %v1606_v11, %v1605_v14 }
0x1748   :  { %v927_v10 = vmul.f32 %v925_v56, %v883_v7  ;;  %v1628_v20 = vmul.f32 %v1600_v6, %v925_v56 }
0x1749   :  { %v1608_v15 = vmul.f32 %v1607_v9, %v894_v47 }
0x174a   :  { %929 = vrot.lane.b32.xlu1 %v927_v10, %s1940_s1 }
0x174b   :  { %1610 = vrot.lane.b32.xlu2 %v1608_v15, %s1940_s1 }
0x1753   :  { %1630 = vrot.lane.b32.xlu2 %v1628_v20, %s1940_s1 }
0x1755   :  { %1618 = vrot.lane.b32.xlu0 %v1616_v22, %s1940_s1 }
0x17a5   :  { %v1611_v24 = vpop.permute.xlu2 %1610 }
0x17a6   :  { %v1613_v39 = vsel %vm901_vm2, %v1611_v24, 0.0 }
0x17a7   :  { %1614 = vadd.xlane.f32.xlu2 %v1613_v39 }
0x17ad   :  { %v1631_v16 = vpop.permute.xlu2 %1630 }
0x17ae   :  { %v1633_v25 = vsel %vm901_vm2, %v1631_v16, 0.0 }
0x17af   :  { %1634 = vadd.xlane.f32.xlu0 %v1633_v25 }
0x17b4   :  { %v918_v34 = vpop.xlane.xlu0 %917 }
0x17b5   :  { %v920_v40 = vrot.slane %v918_v34, 7 }
0x17b7   :  { %v922_v41 = vsub.f32 %v904_v8, %v920_v40 }
0x17bc   :  { %v930_v53 = vpop.permute.xlu1 %929 }
0x17bd   :  { %v932_v57 = vsel %vm901_vm2, %v930_v53, 0.0 }
0x17be   :  { %933 = vadd.xlane.f32.xlu1 %v932_v57 }
0x17c7   :  { %v1619_v42 = vpop.permute.xlu0 %1618 }
0x17c8   :  { %v1621_v26 = vsel %vm915_vm5, %v1619_v42, 0.0 }
0x17c9   :  { %1622 = vadd.xlane.f32.xlu1 %v1621_v26 }
0x181a   :  { %v1615_v51 = vpop.xlane.xlu2 %1614 }
0x1822   :  { %v1635_v36 = vpop.xlane.xlu0 %1634 }
0x1831   :  { %v934_v28 = vpop.xlane.xlu1 %933 }
0x1832   :  { %v935_v29 = vsub.f32 %v922_v41, %v934_v28 }
0x1834   :  { %v936_v31 = vmul.f32 0.125, %v935_v29 }
0x1836   :  { %v937_v32 = vadd.f32 %v936_v31, %v166_v30 }
0x1838   :  { %939 = vst.msk [vmem:[%s2499_s9] sm:$0x1] %vm938_vm6, %v937_v32 }
0x183c   :  { %v1623_v23 = vpop.xlane.xlu1 %1622 }
0x183d   :  { %v1625_v33 = vrot.slane %v1623_v23, 7 }
0x183f   :  { %v1627_v35 = vsub.f32 %v1615_v51, %v1625_v33 }
0x1841   :  { %v1636_v1 = vsub.f32 %v1627_v35, %v1635_v36 }
0x1843   :  { %v1637_v2 = vmul.f32 0.125, %v1636_v1 }
0x1845   :  { %v1638_v3 = vadd.f32 %v1637_v2, %v166_v30 }
0x1847   :  { %1639 = vst.msk [vmem:[%s2499_s9 + $0x1] sm:$0x1] %vm938_vm6, %v1638_v3 }
0x1848   :  { %1644 = vsyncpa [#allocation3], 1 }
0x1849   :  { %1645 = vsyncpa [#allocation5], 1 }
0x184a   :  { %1646 = vsyncpa [#allocation8], 1 }
0x184b   :  { %1647 = vsyncpa [#allocation11], 1 }

</bundles_post_ra>
